<compile_context>
chip_gen: v5e
topology: v5e:2x2
jax: 0.10.0
libtpu: 0.0.40
codegen_flags: <defaults>
</compile_context>

<pallas_src>
import functools

import jax
import jax.numpy as jnp
from jax.experimental import pallas as pl
from jax.experimental.pallas import tpu as pltpu

_INV_SQRT2 = 0.7071067811865475


def _gelu(x):
    # exact (erf) GELU, matching torch.nn.GELU(approximate='none')
    return 0.5 * x * (1.0 + jax.lax.erf(x * _INV_SQRT2))


def _pointwise(wt, x):
    """(cols, k) @ (k, HW) -> (cols, HW), skipping the MXU for tiny k.

    For this module's channel counts (k = 4 or 8) an unrolled per-channel VPU
    FMA over full-lane-width vregs beats a degenerate MXU matmul; fall back to
    jnp.dot when the contraction dim is large.
    """
    k = x.shape[0]
    if k <= 32:
        o = wt[:, 0:1] * x[0:1, :]
        for i in range(1, k):
            o = o + wt[:, i:i + 1] * x[i:i + 1, :]
        return o
    return jnp.dot(wt, x, preferred_element_type=jnp.float32)


_TAPS = ((-1, -1), (-1, 0), (-1, 1),
         (0, -1), (0, 0), (0, 1),
         (1, -1), (1, 0), (1, 1))


# ----------------------------------------------------------------------------
# Fused kernel: conv1(1x1)+GELU+BN1 -> depthwise3x3+GELU(+BN2 folded) -> conv2(1x1)(+BN3 folded)
# One image per grid step; all tensors flattened to (channels, H*W).
# ----------------------------------------------------------------------------
def _fused_kernel(x_ref, w1t_ref, b1_ref, s1_ref, t1_ref,
                  wdwt_ref, bdw_ref, mask_ref, w2t_ref, b2_ref,
                  o_ref, *, H, W):
    HW = H * W

    # ---- conv1: 1x1 conv + bias + GELU + BN1 affine -------------------------
    x = x_ref[...].astype(jnp.float32)                      # (cin, HW)
    h = _pointwise(w1t_ref[...], x) + b1_ref[...]           # (hid, HW)
    a = _gelu(h) * s1_ref[...] + t1_ref[...]                # depthwise input

    # ---- depthwise 3x3 (stride 1, zero-pad 1) + bias + GELU ------------------
    # Each tap is a lane roll of the flattened plane; the precomputed 0/1 mask
    # zeroes boundary contributions (== zero padding of `a`).
    wdwt = wdwt_ref[...]                                    # (hid, 9)
    z = None
    for t, (dh, dw) in enumerate(_TAPS):
        s = dh * W + dw
        if s == 0:
            tap = a
        else:
            tap = pltpu.roll(a, (-s) % HW, axis=1) * mask_ref[t:t + 1, :]
        term = wdwt[:, t:t + 1] * tap
        z = term if z is None else z + term
    z = _gelu(z + bdw_ref[...])                             # (hid, HW)

    # ---- conv2: 1x1 conv; BN2 / BN3 pre-folded into w2t / b2 -----------------
    o = _pointwise(w2t_ref[...], z) + b2_ref[...]           # (cout, HW)
    o_ref[...] = o.astype(o_ref.dtype)


# ----------------------------------------------------------------------------
# Full module forward (NCHW in / NCHW out, like the PyTorch module)
# ----------------------------------------------------------------------------
def depthwise_separable_conv(x_nchw, params):
    N, cin, H, W = x_nchw.shape
    hid = params["w1"].shape[1]
    cout = params["w2"].shape[1]
    HW = H * W

    # NCHW -> (N, C, H*W): pure reshape, no transpose / extra HBM pass.
    x3 = x_nchw.reshape(N, cin, HW).astype(jnp.float32)

    # -------- host-side parameter folding (tiny arrays, once per call) -------
    w1t = params["w1"].T.astype(jnp.float32)                      # (hid, cin)
    b1c = params["b1"].reshape(hid, 1).astype(jnp.float32)
    s1c = params["scale1"].reshape(hid, 1).astype(jnp.float32)
    t1c = params["shift1"].reshape(hid, 1).astype(jnp.float32)
    wdwt = params["wdw"].reshape(9, hid).T.astype(jnp.float32)    # (hid, 9)
    bdwc = params["bdw"].reshape(hid, 1).astype(jnp.float32)
    # Fold BN2 (pre-conv2 affine) and BN3 (post-conv2 affine) into conv2.
    w2a = params["w2"] * params["scale2"][:, None]
    b2a = params["b2"] + params["shift2"] @ params["w2"]
    w2f = w2a * params["scale3"][None, :]
    b2f = b2a * params["scale3"] + params["shift3"]
    w2t = w2f.T.astype(jnp.float32)                               # (cout, hid)
    b2c = b2f.reshape(cout, 1).astype(jnp.float32)

    # Per-tap validity masks for the zero-padded depthwise (built host-side so
    # no integer div/mod is needed inside the kernel).
    rows = jnp.arange(H)[:, None]
    cols = jnp.arange(W)[None, :]
    masks = []
    for dh, dw in _TAPS:
        ok = ((rows + dh >= 0) & (rows + dh < H) &
              (cols + dw >= 0) & (cols + dw < W))
        masks.append(jnp.broadcast_to(ok, (H, W)).reshape(HW))
    tap_mask = jnp.stack(masks).astype(jnp.float32)               # (9, HW)

    kernel = functools.partial(_fused_kernel, H=H, W=W)
    full = lambda n: (0, 0)

    out3 = pl.pallas_call(
        kernel,
        out_shape=jax.ShapeDtypeStruct((N, cout, HW), jnp.float32),
        grid_spec=pltpu.PrefetchScalarGridSpec(
            num_scalar_prefetch=0,
            grid=(N,),                                  # one image per step
            in_specs=[
                pl.BlockSpec((None, cin, HW), lambda n: (n, 0, 0)),
                pl.BlockSpec((hid, cin), full),
                pl.BlockSpec((hid, 1), full),
                pl.BlockSpec((hid, 1), full),
                pl.BlockSpec((hid, 1), full),
                pl.BlockSpec((hid, 9), full),
                pl.BlockSpec((hid, 1), full),
                pl.BlockSpec((9, HW), full),
                pl.BlockSpec((cout, hid), full),
                pl.BlockSpec((cout, 1), full),
            ],
            out_specs=pl.BlockSpec((None, cout, HW), lambda n: (n, 0, 0)),
        ),
        compiler_params=pltpu.CompilerParams(
            dimension_semantics=("parallel",)),          # megacore shards over N
    )(x3, w1t, b1c, s1c, t1c, wdwt, bdwc, tap_mask, w2t, b2c)

    return out3.reshape(N, cout, H, W)


# ----------------------------------------------------------------------------
# Deterministic parameter init (shapes follow the PyTorch module __init__)
# ----------------------------------------------------------------------------
def init_params(key, in_channels, out_channels, eps=1e-5):
    hidden = 8 if in_channels == 3 else out_channels // 4
    keys = jax.random.split(key, 18)

    def bn_fold(kg, kb, km, kv, c):
        gamma = 1.0 + 0.1 * jax.random.normal(kg, (c,), jnp.float32)
        beta = 0.1 * jax.random.normal(kb, (c,), jnp.float32)
        mean = 0.1 * jax.random.normal(km, (c,), jnp.float32)
        var = jax.random.uniform(kv, (c,), jnp.float32, 0.5, 1.5)
        scale = gamma / jnp.sqrt(var + eps)
        shift = beta - mean * scale
        return scale, shift

    p = {}
    # conv1: torch weight (hidden, in, 1, 1) -> ours (in, hidden)
    p["w1"] = 0.3 * jax.random.normal(keys[0], (in_channels, hidden), jnp.float32)
    p["b1"] = 0.1 * jax.random.normal(keys[1], (hidden,), jnp.float32)
    p["scale1"], p["shift1"] = bn_fold(keys[2], keys[3], keys[4], keys[5], hidden)
    # proj: torch weight (hidden, 1, 3, 3) -> ours (3, 3, hidden)
    p["wdw"] = 0.3 * jax.random.normal(keys[6], (3, 3, hidden), jnp.float32)
    p["bdw"] = 0.1 * jax.random.normal(keys[7], (hidden,), jnp.float32)
    p["scale2"], p["shift2"] = bn_fold(keys[8], keys[9], keys[10], keys[11], hidden)
    # conv2: torch weight (out, hidden, 1, 1) -> ours (hidden, out)
    p["w2"] = 0.3 * jax.random.normal(keys[12], (hidden, out_channels), jnp.float32)
    p["b2"] = 0.1 * jax.random.normal(keys[13], (out_channels,), jnp.float32)
    p["scale3"], p["shift3"] = bn_fold(keys[14], keys[15], keys[16], keys[17], out_channels)
    return p


# ----------------------------------------------------------------------------
# Pure-JAX reference (unfolded params; checks BN folding + depthwise taps)
# ----------------------------------------------------------------------------
def reference(x_nchw, params):
    x = jnp.transpose(x_nchw, (0, 2, 3, 1)).astype(jnp.float32)
    h = jnp.einsum("nhwc,cd->nhwd", x, params["w1"]) + params["b1"]
    h = _gelu(h) * params["scale1"] + params["shift1"]
    dw = params["wdw"][:, :, None, :]          # HWIO with I=1 (depthwise)
    h = jax.lax.conv_general_dilated(
        h, dw, window_strides=(1, 1), padding="SAME",
        dimension_numbers=("NHWC", "HWIO", "NHWC"),
        feature_group_count=h.shape[-1]) + params["bdw"]
    h = _gelu(h) * params["scale2"] + params["shift2"]
    o = jnp.einsum("nhwc,cd->nhwd", h, params["w2"]) + params["b2"]
    o = o * params["scale3"] + params["shift3"]
    return jnp.transpose(o, (0, 3, 1, 2))


if __name__ == "__main__":
    key = jax.random.PRNGKey(0)
    kx, kp = jax.random.split(key)

    in_channels, out_channels = 4, 32          # hidden_features = 32 // 4 = 8
    x = jax.random.normal(kx, (2, in_channels, 16, 16), jnp.float32)
    params = init_params(kp, in_channels, out_channels)

    out = jax.block_until_ready(depthwise_separable_conv(x, params))
    ref = jax.block_until_ready(reference(x, params))

    assert out.shape == (2, out_channels, 16, 16), out.shape
    assert jnp.allclose(out, ref, rtol=1e-5, atol=1e-4), float(jnp.max(jnp.abs(out - ref)))
    print("KERNEL_OK")
</pallas_src>

<mosaic_0001>
module attributes {stable_mosaic.version = 11 : i64} {
  func.func @_fused_kernel(%arg0: i32, %arg1: memref<1x4x256xf32, #tpu.memory_space<vmem>>, %arg2: memref<8x4xf32, #tpu.memory_space<vmem>>, %arg3: memref<8x1xf32, #tpu.memory_space<vmem>>, %arg4: memref<8x1xf32, #tpu.memory_space<vmem>>, %arg5: memref<8x1xf32, #tpu.memory_space<vmem>>, %arg6: memref<8x9xf32, #tpu.memory_space<vmem>>, %arg7: memref<8x1xf32, #tpu.memory_space<vmem>>, %arg8: memref<9x256xf32, #tpu.memory_space<vmem>>, %arg9: memref<32x8xf32, #tpu.memory_space<vmem>>, %arg10: memref<32x1xf32, #tpu.memory_space<vmem>>, %arg11: memref<1x32x256xf32, #tpu.memory_space<vmem>>) attributes {dimension_semantics = [#tpu.dimension_semantics<parallel>], iteration_bounds = array<i64: 2>, scalar_prefetch = 0 : i64, scratch_operands = 0 : i64, tpu.core_type = #tpu.core_type<tc>, window_params = [{transform_indices = @transform_0, window_bounds = array<i64: 1, 4, 256>}, {pipeline_mode = #tpu.pipeline_mode<synchronous>, transform_indices = @transform_1, window_bounds = array<i64: 8, 4>}, {pipeline_mode = #tpu.pipeline_mode<synchronous>, transform_indices = @transform_2, window_bounds = array<i64: 8, 1>}, {pipeline_mode = #tpu.pipeline_mode<synchronous>, transform_indices = @transform_3, window_bounds = array<i64: 8, 1>}, {pipeline_mode = #tpu.pipeline_mode<synchronous>, transform_indices = @transform_4, window_bounds = array<i64: 8, 1>}, {pipeline_mode = #tpu.pipeline_mode<synchronous>, transform_indices = @transform_5, window_bounds = array<i64: 8, 9>}, {pipeline_mode = #tpu.pipeline_mode<synchronous>, transform_indices = @transform_6, window_bounds = array<i64: 8, 1>}, {pipeline_mode = #tpu.pipeline_mode<synchronous>, transform_indices = @transform_7, window_bounds = array<i64: 9, 256>}, {pipeline_mode = #tpu.pipeline_mode<synchronous>, transform_indices = @transform_8, window_bounds = array<i64: 32, 8>}, {pipeline_mode = #tpu.pipeline_mode<synchronous>, transform_indices = @transform_9, window_bounds = array<i64: 32, 1>}, {transform_indices = @transform_10, window_bounds = array<i64: 1, 32, 256>}]} {
    %c0 = arith.constant 0 : index
    %c0_0 = arith.constant 0 : index
    %c0_1 = arith.constant 0 : index
    %0 = vector.load %arg1[%c0, %c0_0, %c0_1] : memref<1x4x256xf32, #tpu.memory_space<vmem>>, vector<1x4x256xf32>
    %1 = vector.shape_cast %0 : vector<1x4x256xf32> to vector<4x256xf32>
    %c0_2 = arith.constant 0 : index
    %c0_3 = arith.constant 0 : index
    %2 = vector.load %arg2[%c0_2, %c0_3] : memref<8x4xf32, #tpu.memory_space<vmem>>, vector<8x4xf32>
    %3 = vector.extract_strided_slice %2 {offsets = [0, 0], sizes = [8, 1], strides = [1, 1]} : vector<8x4xf32> to vector<8x1xf32>
    %4 = vector.extract_strided_slice %1 {offsets = [0, 0], sizes = [1, 256], strides = [1, 1]} : vector<4x256xf32> to vector<1x256xf32>
    %5 = vector.broadcast %3 : vector<8x1xf32> to vector<8x256xf32>
    %6 = vector.broadcast %4 : vector<1x256xf32> to vector<8x256xf32>
    %7 = arith.mulf %5, %6 : vector<8x256xf32>
    %8 = vector.extract_strided_slice %2 {offsets = [0, 1], sizes = [8, 1], strides = [1, 1]} : vector<8x4xf32> to vector<8x1xf32>
    %9 = vector.extract_strided_slice %1 {offsets = [1, 0], sizes = [1, 256], strides = [1, 1]} : vector<4x256xf32> to vector<1x256xf32>
    %10 = vector.broadcast %8 : vector<8x1xf32> to vector<8x256xf32>
    %11 = vector.broadcast %9 : vector<1x256xf32> to vector<8x256xf32>
    %12 = arith.mulf %10, %11 : vector<8x256xf32>
    %13 = arith.addf %7, %12 : vector<8x256xf32>
    %14 = vector.extract_strided_slice %2 {offsets = [0, 2], sizes = [8, 1], strides = [1, 1]} : vector<8x4xf32> to vector<8x1xf32>
    %15 = vector.extract_strided_slice %1 {offsets = [2, 0], sizes = [1, 256], strides = [1, 1]} : vector<4x256xf32> to vector<1x256xf32>
    %16 = vector.broadcast %14 : vector<8x1xf32> to vector<8x256xf32>
    %17 = vector.broadcast %15 : vector<1x256xf32> to vector<8x256xf32>
    %18 = arith.mulf %16, %17 : vector<8x256xf32>
    %19 = arith.addf %13, %18 : vector<8x256xf32>
    %20 = vector.extract_strided_slice %2 {offsets = [0, 3], sizes = [8, 1], strides = [1, 1]} : vector<8x4xf32> to vector<8x1xf32>
    %21 = vector.extract_strided_slice %1 {offsets = [3, 0], sizes = [1, 256], strides = [1, 1]} : vector<4x256xf32> to vector<1x256xf32>
    %22 = vector.broadcast %20 : vector<8x1xf32> to vector<8x256xf32>
    %23 = vector.broadcast %21 : vector<1x256xf32> to vector<8x256xf32>
    %24 = arith.mulf %22, %23 : vector<8x256xf32>
    %25 = arith.addf %19, %24 : vector<8x256xf32>
    %c0_4 = arith.constant 0 : index
    %c0_5 = arith.constant 0 : index
    %26 = vector.load %arg3[%c0_4, %c0_5] : memref<8x1xf32, #tpu.memory_space<vmem>>, vector<8x1xf32>
    %27 = vector.broadcast %26 : vector<8x1xf32> to vector<8x256xf32>
    %28 = arith.addf %25, %27 : vector<8x256xf32>
    %cst = arith.constant 5.000000e-01 : f32
    %29 = vector.broadcast %cst : f32 to vector<8x256xf32>
    %30 = arith.mulf %29, %28 : vector<8x256xf32>
    %cst_6 = arith.constant 0.707106769 : f32
    %31 = vector.broadcast %cst_6 : f32 to vector<8x256xf32>
    %32 = arith.mulf %28, %31 : vector<8x256xf32>
    %33 = math.erf %32 : vector<8x256xf32>
    %cst_7 = arith.constant 1.000000e+00 : f32
    %34 = vector.broadcast %cst_7 : f32 to vector<8x256xf32>
    %35 = arith.addf %34, %33 : vector<8x256xf32>
    %36 = arith.mulf %30, %35 : vector<8x256xf32>
    %c0_8 = arith.constant 0 : index
    %c0_9 = arith.constant 0 : index
    %37 = vector.load %arg4[%c0_8, %c0_9] : memref<8x1xf32, #tpu.memory_space<vmem>>, vector<8x1xf32>
    %38 = vector.broadcast %37 : vector<8x1xf32> to vector<8x256xf32>
    %39 = arith.mulf %36, %38 : vector<8x256xf32>
    %c0_10 = arith.constant 0 : index
    %c0_11 = arith.constant 0 : index
    %40 = vector.load %arg5[%c0_10, %c0_11] : memref<8x1xf32, #tpu.memory_space<vmem>>, vector<8x1xf32>
    %41 = vector.broadcast %40 : vector<8x1xf32> to vector<8x256xf32>
    %42 = arith.addf %39, %41 : vector<8x256xf32>
    %c0_12 = arith.constant 0 : index
    %c0_13 = arith.constant 0 : index
    %43 = vector.load %arg6[%c0_12, %c0_13] : memref<8x9xf32, #tpu.memory_space<vmem>>, vector<8x9xf32>
    %c17_i32 = arith.constant 17 : i32
    %44 = tpu.dynamic_rotate %42 by %c17_i32 dim 1 : vector<8x256xf32>, i32 -> vector<8x256xf32>
    %c0_14 = arith.constant 0 : index
    %c0_15 = arith.constant 0 : index
    %45 = vector.load %arg8[%c0_14, %c0_15] : memref<9x256xf32, #tpu.memory_space<vmem>>, vector<1x256xf32>
    %46 = vector.broadcast %45 : vector<1x256xf32> to vector<8x256xf32>
    %47 = arith.mulf %44, %46 : vector<8x256xf32>
    %48 = vector.extract_strided_slice %43 {offsets = [0, 0], sizes = [8, 1], strides = [1, 1]} : vector<8x9xf32> to vector<8x1xf32>
    %49 = vector.broadcast %48 : vector<8x1xf32> to vector<8x256xf32>
    %50 = arith.mulf %49, %47 : vector<8x256xf32>
    %c16_i32 = arith.constant 16 : i32
    %51 = tpu.dynamic_rotate %42 by %c16_i32 dim 1 : vector<8x256xf32>, i32 -> vector<8x256xf32>
    %c1 = arith.constant 1 : index
    %c0_16 = arith.constant 0 : index
    %52 = vector.load %arg8[%c1, %c0_16] : memref<9x256xf32, #tpu.memory_space<vmem>>, vector<1x256xf32>
    %53 = vector.broadcast %52 : vector<1x256xf32> to vector<8x256xf32>
    %54 = arith.mulf %51, %53 : vector<8x256xf32>
    %55 = vector.extract_strided_slice %43 {offsets = [0, 1], sizes = [8, 1], strides = [1, 1]} : vector<8x9xf32> to vector<8x1xf32>
    %56 = vector.broadcast %55 : vector<8x1xf32> to vector<8x256xf32>
    %57 = arith.mulf %56, %54 : vector<8x256xf32>
    %58 = arith.addf %50, %57 : vector<8x256xf32>
    %c15_i32 = arith.constant 15 : i32
    %59 = tpu.dynamic_rotate %42 by %c15_i32 dim 1 : vector<8x256xf32>, i32 -> vector<8x256xf32>
    %c2 = arith.constant 2 : index
    %c0_17 = arith.constant 0 : index
    %60 = vector.load %arg8[%c2, %c0_17] : memref<9x256xf32, #tpu.memory_space<vmem>>, vector<1x256xf32>
    %61 = vector.broadcast %60 : vector<1x256xf32> to vector<8x256xf32>
    %62 = arith.mulf %59, %61 : vector<8x256xf32>
    %63 = vector.extract_strided_slice %43 {offsets = [0, 2], sizes = [8, 1], strides = [1, 1]} : vector<8x9xf32> to vector<8x1xf32>
    %64 = vector.broadcast %63 : vector<8x1xf32> to vector<8x256xf32>
    %65 = arith.mulf %64, %62 : vector<8x256xf32>
    %66 = arith.addf %58, %65 : vector<8x256xf32>
    %c1_i32 = arith.constant 1 : i32
    %67 = tpu.dynamic_rotate %42 by %c1_i32 dim 1 : vector<8x256xf32>, i32 -> vector<8x256xf32>
    %c3 = arith.constant 3 : index
    %c0_18 = arith.constant 0 : index
    %68 = vector.load %arg8[%c3, %c0_18] : memref<9x256xf32, #tpu.memory_space<vmem>>, vector<1x256xf32>
    %69 = vector.broadcast %68 : vector<1x256xf32> to vector<8x256xf32>
    %70 = arith.mulf %67, %69 : vector<8x256xf32>
    %71 = vector.extract_strided_slice %43 {offsets = [0, 3], sizes = [8, 1], strides = [1, 1]} : vector<8x9xf32> to vector<8x1xf32>
    %72 = vector.broadcast %71 : vector<8x1xf32> to vector<8x256xf32>
    %73 = arith.mulf %72, %70 : vector<8x256xf32>
    %74 = arith.addf %66, %73 : vector<8x256xf32>
    %75 = vector.extract_strided_slice %43 {offsets = [0, 4], sizes = [8, 1], strides = [1, 1]} : vector<8x9xf32> to vector<8x1xf32>
    %76 = vector.broadcast %75 : vector<8x1xf32> to vector<8x256xf32>
    %77 = arith.mulf %76, %42 : vector<8x256xf32>
    %78 = arith.addf %74, %77 : vector<8x256xf32>
    %c255_i32 = arith.constant 255 : i32
    %79 = tpu.dynamic_rotate %42 by %c255_i32 dim 1 : vector<8x256xf32>, i32 -> vector<8x256xf32>
    %c5 = arith.constant 5 : index
    %c0_19 = arith.constant 0 : index
    %80 = vector.load %arg8[%c5, %c0_19] : memref<9x256xf32, #tpu.memory_space<vmem>>, vector<1x256xf32>
    %81 = vector.broadcast %80 : vector<1x256xf32> to vector<8x256xf32>
    %82 = arith.mulf %79, %81 : vector<8x256xf32>
    %83 = vector.extract_strided_slice %43 {offsets = [0, 5], sizes = [8, 1], strides = [1, 1]} : vector<8x9xf32> to vector<8x1xf32>
    %84 = vector.broadcast %83 : vector<8x1xf32> to vector<8x256xf32>
    %85 = arith.mulf %84, %82 : vector<8x256xf32>
    %86 = arith.addf %78, %85 : vector<8x256xf32>
    %c241_i32 = arith.constant 241 : i32
    %87 = tpu.dynamic_rotate %42 by %c241_i32 dim 1 : vector<8x256xf32>, i32 -> vector<8x256xf32>
    %c6 = arith.constant 6 : index
    %c0_20 = arith.constant 0 : index
    %88 = vector.load %arg8[%c6, %c0_20] : memref<9x256xf32, #tpu.memory_space<vmem>>, vector<1x256xf32>
    %89 = vector.broadcast %88 : vector<1x256xf32> to vector<8x256xf32>
    %90 = arith.mulf %87, %89 : vector<8x256xf32>
    %91 = vector.extract_strided_slice %43 {offsets = [0, 6], sizes = [8, 1], strides = [1, 1]} : vector<8x9xf32> to vector<8x1xf32>
    %92 = vector.broadcast %91 : vector<8x1xf32> to vector<8x256xf32>
    %93 = arith.mulf %92, %90 : vector<8x256xf32>
    %94 = arith.addf %86, %93 : vector<8x256xf32>
    %c240_i32 = arith.constant 240 : i32
    %95 = tpu.dynamic_rotate %42 by %c240_i32 dim 1 : vector<8x256xf32>, i32 -> vector<8x256xf32>
    %c7 = arith.constant 7 : index
    %c0_21 = arith.constant 0 : index
    %96 = vector.load %arg8[%c7, %c0_21] : memref<9x256xf32, #tpu.memory_space<vmem>>, vector<1x256xf32>
    %97 = vector.broadcast %96 : vector<1x256xf32> to vector<8x256xf32>
    %98 = arith.mulf %95, %97 : vector<8x256xf32>
    %99 = vector.extract_strided_slice %43 {offsets = [0, 7], sizes = [8, 1], strides = [1, 1]} : vector<8x9xf32> to vector<8x1xf32>
    %100 = vector.broadcast %99 : vector<8x1xf32> to vector<8x256xf32>
    %101 = arith.mulf %100, %98 : vector<8x256xf32>
    %102 = arith.addf %94, %101 : vector<8x256xf32>
    %c239_i32 = arith.constant 239 : i32
    %103 = tpu.dynamic_rotate %42 by %c239_i32 dim 1 : vector<8x256xf32>, i32 -> vector<8x256xf32>
    %c8 = arith.constant 8 : index
    %c0_22 = arith.constant 0 : index
    %104 = vector.load %arg8[%c8, %c0_22] : memref<9x256xf32, #tpu.memory_space<vmem>>, vector<1x256xf32>
    %105 = vector.broadcast %104 : vector<1x256xf32> to vector<8x256xf32>
    %106 = arith.mulf %103, %105 : vector<8x256xf32>
    %107 = vector.extract_strided_slice %43 {offsets = [0, 8], sizes = [8, 1], strides = [1, 1]} : vector<8x9xf32> to vector<8x1xf32>
    %108 = vector.broadcast %107 : vector<8x1xf32> to vector<8x256xf32>
    %109 = arith.mulf %108, %106 : vector<8x256xf32>
    %110 = arith.addf %102, %109 : vector<8x256xf32>
    %c0_23 = arith.constant 0 : index
    %c0_24 = arith.constant 0 : index
    %111 = vector.load %arg7[%c0_23, %c0_24] : memref<8x1xf32, #tpu.memory_space<vmem>>, vector<8x1xf32>
    %112 = vector.broadcast %111 : vector<8x1xf32> to vector<8x256xf32>
    %113 = arith.addf %110, %112 : vector<8x256xf32>
    %cst_25 = arith.constant 5.000000e-01 : f32
    %114 = vector.broadcast %cst_25 : f32 to vector<8x256xf32>
    %115 = arith.mulf %114, %113 : vector<8x256xf32>
    %cst_26 = arith.constant 0.707106769 : f32
    %116 = vector.broadcast %cst_26 : f32 to vector<8x256xf32>
    %117 = arith.mulf %113, %116 : vector<8x256xf32>
    %118 = math.erf %117 : vector<8x256xf32>
    %cst_27 = arith.constant 1.000000e+00 : f32
    %119 = vector.broadcast %cst_27 : f32 to vector<8x256xf32>
    %120 = arith.addf %119, %118 : vector<8x256xf32>
    %121 = arith.mulf %115, %120 : vector<8x256xf32>
    %c0_28 = arith.constant 0 : index
    %c0_29 = arith.constant 0 : index
    %122 = vector.load %arg9[%c0_28, %c0_29] : memref<32x8xf32, #tpu.memory_space<vmem>>, vector<32x8xf32>
    %123 = vector.extract_strided_slice %122 {offsets = [0, 0], sizes = [32, 1], strides = [1, 1]} : vector<32x8xf32> to vector<32x1xf32>
    %124 = vector.extract_strided_slice %121 {offsets = [0, 0], sizes = [1, 256], strides = [1, 1]} : vector<8x256xf32> to vector<1x256xf32>
    %125 = vector.broadcast %123 : vector<32x1xf32> to vector<32x256xf32>
    %126 = vector.broadcast %124 : vector<1x256xf32> to vector<32x256xf32>
    %127 = arith.mulf %125, %126 : vector<32x256xf32>
    %128 = vector.extract_strided_slice %122 {offsets = [0, 1], sizes = [32, 1], strides = [1, 1]} : vector<32x8xf32> to vector<32x1xf32>
    %129 = vector.extract_strided_slice %121 {offsets = [1, 0], sizes = [1, 256], strides = [1, 1]} : vector<8x256xf32> to vector<1x256xf32>
    %130 = vector.broadcast %128 : vector<32x1xf32> to vector<32x256xf32>
    %131 = vector.broadcast %129 : vector<1x256xf32> to vector<32x256xf32>
    %132 = arith.mulf %130, %131 : vector<32x256xf32>
    %133 = arith.addf %127, %132 : vector<32x256xf32>
    %134 = vector.extract_strided_slice %122 {offsets = [0, 2], sizes = [32, 1], strides = [1, 1]} : vector<32x8xf32> to vector<32x1xf32>
    %135 = vector.extract_strided_slice %121 {offsets = [2, 0], sizes = [1, 256], strides = [1, 1]} : vector<8x256xf32> to vector<1x256xf32>
    %136 = vector.broadcast %134 : vector<32x1xf32> to vector<32x256xf32>
    %137 = vector.broadcast %135 : vector<1x256xf32> to vector<32x256xf32>
    %138 = arith.mulf %136, %137 : vector<32x256xf32>
    %139 = arith.addf %133, %138 : vector<32x256xf32>
    %140 = vector.extract_strided_slice %122 {offsets = [0, 3], sizes = [32, 1], strides = [1, 1]} : vector<32x8xf32> to vector<32x1xf32>
    %141 = vector.extract_strided_slice %121 {offsets = [3, 0], sizes = [1, 256], strides = [1, 1]} : vector<8x256xf32> to vector<1x256xf32>
    %142 = vector.broadcast %140 : vector<32x1xf32> to vector<32x256xf32>
    %143 = vector.broadcast %141 : vector<1x256xf32> to vector<32x256xf32>
    %144 = arith.mulf %142, %143 : vector<32x256xf32>
    %145 = arith.addf %139, %144 : vector<32x256xf32>
    %146 = vector.extract_strided_slice %122 {offsets = [0, 4], sizes = [32, 1], strides = [1, 1]} : vector<32x8xf32> to vector<32x1xf32>
    %147 = vector.extract_strided_slice %121 {offsets = [4, 0], sizes = [1, 256], strides = [1, 1]} : vector<8x256xf32> to vector<1x256xf32>
    %148 = vector.broadcast %146 : vector<32x1xf32> to vector<32x256xf32>
    %149 = vector.broadcast %147 : vector<1x256xf32> to vector<32x256xf32>
    %150 = arith.mulf %148, %149 : vector<32x256xf32>
    %151 = arith.addf %145, %150 : vector<32x256xf32>
    %152 = vector.extract_strided_slice %122 {offsets = [0, 5], sizes = [32, 1], strides = [1, 1]} : vector<32x8xf32> to vector<32x1xf32>
    %153 = vector.extract_strided_slice %121 {offsets = [5, 0], sizes = [1, 256], strides = [1, 1]} : vector<8x256xf32> to vector<1x256xf32>
    %154 = vector.broadcast %152 : vector<32x1xf32> to vector<32x256xf32>
    %155 = vector.broadcast %153 : vector<1x256xf32> to vector<32x256xf32>
    %156 = arith.mulf %154, %155 : vector<32x256xf32>
    %157 = arith.addf %151, %156 : vector<32x256xf32>
    %158 = vector.extract_strided_slice %122 {offsets = [0, 6], sizes = [32, 1], strides = [1, 1]} : vector<32x8xf32> to vector<32x1xf32>
    %159 = vector.extract_strided_slice %121 {offsets = [6, 0], sizes = [1, 256], strides = [1, 1]} : vector<8x256xf32> to vector<1x256xf32>
    %160 = vector.broadcast %158 : vector<32x1xf32> to vector<32x256xf32>
    %161 = vector.broadcast %159 : vector<1x256xf32> to vector<32x256xf32>
    %162 = arith.mulf %160, %161 : vector<32x256xf32>
    %163 = arith.addf %157, %162 : vector<32x256xf32>
    %164 = vector.extract_strided_slice %122 {offsets = [0, 7], sizes = [32, 1], strides = [1, 1]} : vector<32x8xf32> to vector<32x1xf32>
    %165 = vector.extract_strided_slice %121 {offsets = [7, 0], sizes = [1, 256], strides = [1, 1]} : vector<8x256xf32> to vector<1x256xf32>
    %166 = vector.broadcast %164 : vector<32x1xf32> to vector<32x256xf32>
    %167 = vector.broadcast %165 : vector<1x256xf32> to vector<32x256xf32>
    %168 = arith.mulf %166, %167 : vector<32x256xf32>
    %169 = arith.addf %163, %168 : vector<32x256xf32>
    %c0_30 = arith.constant 0 : index
    %c0_31 = arith.constant 0 : index
    %170 = vector.load %arg10[%c0_30, %c0_31] : memref<32x1xf32, #tpu.memory_space<vmem>>, vector<32x1xf32>
    %171 = vector.broadcast %170 : vector<32x1xf32> to vector<32x256xf32>
    %172 = arith.addf %169, %171 : vector<32x256xf32>
    %c0_32 = arith.constant 0 : index
    %c0_33 = arith.constant 0 : index
    %c0_34 = arith.constant 0 : index
    %173 = vector.load %arg11[%c0_32, %c0_33, %c0_34] : memref<1x32x256xf32, #tpu.memory_space<vmem>>, vector<1x32x256xf32>
    %174 = vector.shape_cast %173 : vector<1x32x256xf32> to vector<32x256xf32>
    %175 = vector.shape_cast %172 : vector<32x256xf32> to vector<1x32x256xf32>
    tpu.vector_store %arg11[%c0_32, %c0_33, %c0_34], %175 {strides = array<i32>} : memref<1x32x256xf32, #tpu.memory_space<vmem>>, vector<1x32x256xf32>,
    return
  }
  func.func @transform_0(%arg0: i32) -> (i32, i32, i32) {
    %c0_i32 = arith.constant 0 : i32
    %c0_i32_0 = arith.constant 0 : i32
    %c0_i32_1 = arith.constant 0 : i32
    return %arg0, %c0_i32, %c0_i32_0 : i32, i32, i32
  }
  func.func @transform_1(%arg0: i32) -> (i32, i32) {
    %c0_i32 = arith.constant 0 : i32
    %c0_i32_0 = arith.constant 0 : i32
    %c0_i32_1 = arith.constant 0 : i32
    return %c0_i32, %c0_i32_0 : i32, i32
  }
  func.func @transform_2(%arg0: i32) -> (i32, i32) {
    %c0_i32 = arith.constant 0 : i32
    %c0_i32_0 = arith.constant 0 : i32
    %c0_i32_1 = arith.constant 0 : i32
    return %c0_i32, %c0_i32_0 : i32, i32
  }
  func.func @transform_3(%arg0: i32) -> (i32, i32) {
    %c0_i32 = arith.constant 0 : i32
    %c0_i32_0 = arith.constant 0 : i32
    %c0_i32_1 = arith.constant 0 : i32
    return %c0_i32, %c0_i32_0 : i32, i32
  }
  func.func @transform_4(%arg0: i32) -> (i32, i32) {
    %c0_i32 = arith.constant 0 : i32
    %c0_i32_0 = arith.constant 0 : i32
    %c0_i32_1 = arith.constant 0 : i32
    return %c0_i32, %c0_i32_0 : i32, i32
  }
  func.func @transform_5(%arg0: i32) -> (i32, i32) {
    %c0_i32 = arith.constant 0 : i32
    %c0_i32_0 = arith.constant 0 : i32
    %c0_i32_1 = arith.constant 0 : i32
    return %c0_i32, %c0_i32_0 : i32, i32
  }
  func.func @transform_6(%arg0: i32) -> (i32, i32) {
    %c0_i32 = arith.constant 0 : i32
    %c0_i32_0 = arith.constant 0 : i32
    %c0_i32_1 = arith.constant 0 : i32
    return %c0_i32, %c0_i32_0 : i32, i32
  }
  func.func @transform_7(%arg0: i32) -> (i32, i32) {
    %c0_i32 = arith.constant 0 : i32
    %c0_i32_0 = arith.constant 0 : i32
    %c0_i32_1 = arith.constant 0 : i32
    return %c0_i32, %c0_i32_0 : i32, i32
  }
  func.func @transform_8(%arg0: i32) -> (i32, i32) {
    %c0_i32 = arith.constant 0 : i32
    %c0_i32_0 = arith.constant 0 : i32
    %c0_i32_1 = arith.constant 0 : i32
    return %c0_i32, %c0_i32_0 : i32, i32
  }
  func.func @transform_9(%arg0: i32) -> (i32, i32) {
    %c0_i32 = arith.constant 0 : i32
    %c0_i32_0 = arith.constant 0 : i32
    %c0_i32_1 = arith.constant 0 : i32
    return %c0_i32, %c0_i32_0 : i32, i32
  }
  func.func @transform_10(%arg0: i32) -> (i32, i32, i32) {
    %c0_i32 = arith.constant 0 : i32
    %c0_i32_0 = arith.constant 0 : i32
    %c0_i32_1 = arith.constant 0 : i32
    return %arg0, %c0_i32, %c0_i32_0 : i32, i32, i32
  }
}

</mosaic_0001>

<bundles_post_ra>
// kernel: tpu_custom_call.1
= control target key start
LH: loop header
LB: loop body
LE: loop exit
PB: predicated region body
PF: predicated region fallthrough
CT: control target
= control target key end

     0   :  { %15 = vsyncpa [#allocation3], 0  ;;  %s2021_s0 = inlined_call_operand.vmem [shape: f32[2,4,256], index: 0, kind: input, shape index: {}]   ;;  %s2022_s1 = inlined_call_operand.vmem [shape: f32[8,4], index: 1, kind: input, shape index: {}]   ;;  %s2023_s2 = inlined_call_operand.vmem [shape: f32[8,1], index: 2, kind: input, shape index: {}]   ;;  %s2024_s3 = inlined_call_operand.vmem [shape: f32[8,1], index: 3, kind: input, shape index: {}]   ;;  %s2025_s4 = inlined_call_operand.vmem [shape: f32[8,1], index: 4, kind: input, shape index: {}]   ;;  %s2026_s5 = inlined_call_operand.vmem [shape: f32[8,9], index: 5, kind: input, shape index: {}]   ;;  %s2027_s6 = inlined_call_operand.vmem [shape: f32[8,1], index: 6, kind: input, shape index: {}]   ;;  %s2028_s7 = inlined_call_operand.vmem [shape: f32[9,256], index: 7, kind: input, shape index: {}]   ;;  %s2029_s8 = inlined_call_operand.vmem [shape: f32[32,8], index: 8, kind: input, shape index: {}]   ;;  %s2030_s9 = inlined_call_operand.vmem [shape: f32[32,1], index: 9, kind: input, shape index: {}]   ;;  %s2031_s10 = inlined_call_operand.hbm [shape: f32[2,32,256], index: 10, kind: output, shape index: {}]  }
   0x1   :  { %17 = vsyncpa [#allocation3 + $0x1], 0  ;;  %s1482_s13 = smov 0   ;;  %s1484_s14 = smov 0  }
   0x2   :  { %s1486_s15 = smov 0   ;;  %s1488_s16 = smov 0  }
   0x3 LB: > { %s1503_s17 = sadd.s32 4294967295, %s1407_s16   ;;  %s1215_s18 = sadd.s32 4294967294, %s1407_s16   ;;  %s1407_s16 = sphi %s1488_s16, %s2039_s16   ;;  %s1403_s15 = sphi %s1486_s15, %s2038_s15   ;;  %s1399_s14 = sphi %s1484_s14, %s2037_s14   ;;  %s1395_s13 = sphi %s1482_s13, %s2036_s13  }
   0x4   : > { %s1507_s19 = sadd.s32 1, %s1407_s16   ;;  %s245_s20 = sadd.s32 1, %s1403_s15 }
   0x5   : > { %s242_s21 = ssub.s32 %s1407_s16, %s1507_s19  ;;  %p255_p0 = scmp.ne.s32.totalorder %s1403_s15, %s1399_s14 }
   0x6   : > { %p243_p1 = scmp.eq.s32.totalorder %s242_s21, 0  ;;  %p256_p2 = scmp.eq.s32.totalorder %s1503_s17, 1 }
   0x7   : > { %p261_p3 = scmp.ne.s32.totalorder %s1399_s14, %s1395_s13  ;;  %p262_p4 = scmp.eq.s32.totalorder %s1215_s18, 1 }
   0x8   : > { %s1518_s22 = scalar_select %p243_p1, %s1403_s15, %s245_s20  }
   0x9   : > { %p1520_p5 = por %p256_p2, %p255_p0  ;;  %p1524_p6 = por %p262_p4, %p261_p3 }
   0xa   : > { %p1218_p7 = scmp.ge.s32.totalorder %s1407_s16, 1  ;;  %p315_p8 = scmp.lt.s32.totalorder %s1407_s16, 3 }
   0xc   : > { %p316_p9 = pnand %p1218_p7, %p315_p8 }
   0xd   : > { %p353_p10 = scmp.lt.s32.totalorder (!%p316_p9), %s1503_s17, 1  ;;  %s1419_s29 = smov (!%p316_p9), 127  }
   0xe   : > { %319 = sbr.rel (%p316_p9) target bundleno = 489 (0x1e9), region = 60  ;;  %s2032_s30 = smov (!%p316_p9), 16  }
   0xf   : > { %s1421_s11 = smov (!%p316_p9), 113   ;;  %s1422_s12 = smov (!%p316_p9), 15  }
  0x10   : > { %s1423_s18 = smov (!%p316_p9), 112   ;;  %s1424_s20 = smov (!%p316_p9), 1  }
  0x13   : > { %v359_v0 = vld [vmem:[%s2022_s1] sm:$0xff]  ;;  %v1409_v1 = vmov 0   ;;  %v1410_v2 = vmov 2   ;;  %v1411_v5 = vmov 1   ;;  %v1412_v6 = vmov 3   ;;  %s354_s21 = scalar_select %p353_p10, %s1503_s17, 1 }
  0x14   : > { %1297 = vset.pattern.permute.xlu0 %v1409_v1  ;;  %1299 = vset.pattern.permute.xlu1 %v1410_v2  ;;  %v416_v3 = vld [vmem:[%s2023_s2] sm:$0xff]  ;;  %v1413_v9 = vmov 4   ;;  %v1414_v10 = vmov 5   ;;  %v1415_v11 = vmov 6   ;;  %v1416_v15 = vmov 7   ;;  %v1579_v53 = vld [vmem:[%s2029_s8 + $0x8] sm:$0xff] }
  0x15   : > { %362 = vperm.xlu0 %1297, %v359_v0   ;;  %389 = vperm.xlu1 %1299, %v359_v0   ;;  %v512_v4 = vld [vmem:[%s2024_s3] sm:$0xff]  ;;  %s1238_s25 = sshll.u32 %s354_s21, 3  ;;  %v1417_v38 = vmov 8   ;;  %v1584_v54 = vld [vmem:[%s2029_s8 + $0x10] sm:$0xff]  ;;  %s1425_s21 = smov 111  }
  0x16   : > { %1301 = vset.pattern.permute.xlu2 %v1409_v1  ;;  %v520_v7 = vld [vmem:[%s2025_s4] sm:$0xff]  ;;  %s357_s28 = scalar_lea.vmem %s2021_s0, %s1238_s25 }
  0x17   : > { %419 = vperm.xlu2 %1301, %v416_v3   ;;  %v528_v8 = vld [vmem:[%s2026_s5] sm:$0xff]  ;;  %v1601_v3 = vld [vmem:[%s2029_s8 + $0x18] sm:$0xff] }
  0x18   : > { %v358_v12 = vld [vmem:[%s357_s28] sm:$0xff]  ;;  %s1418_s28 = smov 17  }
  0x19   : > { %v366_v16 = vperm.slane %v358_v12, 0  ;;  %v367_v17 = vperm.slane %v358_v12, 4  ;;  %v378_v18 = vperm.slane %v358_v12, 1  ;;  %v379_v19 = vperm.slane %v358_v12, 5  ;;  %v1568_v41 = vld [vmem:[%s2029_s8] sm:$0xff] }
  0x1a   : > { %v392_v20 = vperm.slane %v358_v12, 2  ;;  %v393_v21 = vperm.slane %v358_v12, 6  ;;  %v406_v22 = vperm.slane %v358_v12, 3  ;;  %v407_v23 = vperm.slane %v358_v12, 7 }
  0x1b   : > { %v370_v24 = vperm.slane %v366_v16, 0  ;;  %v371_v25 = vperm.slane %v367_v17, 0  ;;  %v382_v26 = vperm.slane %v378_v18, 1  ;;  %v383_v27 = vperm.slane %v379_v19, 1 }
  0x1c   : > { %v396_v28 = vperm.slane %v392_v20, 2  ;;  %v397_v29 = vperm.slane %v393_v21, 2  ;;  %v410_v30 = vperm.slane %v406_v22, 3  ;;  %v411_v31 = vperm.slane %v407_v23, 3 }
  0x1d   : > { %1298 = vset.pattern.permute.xlu0 %v1411_v5  ;;  %1300 = vset.pattern.permute.xlu1 %v1412_v6 }
  0x1e   : > { %375 = vperm.xlu0 %1298, %v359_v0   ;;  %403 = vperm.xlu1 %1300, %v359_v0  }
  0x1f   : > { %515 = vperm.xlu2 %1301, %v512_v4   ;;  %v729_v4 = vld [vmem:[%s2027_s6] sm:$0xff] }
  0x26   : > { %1302 = vset.pattern.permute.xlu1 %v1409_v1  ;;  %1311 = vset.pattern.permute.xlu0 %v1409_v1 }
  0x27   : > { %523 = vperm.xlu1 %1302, %v520_v7   ;;  %1306 = vset.pattern.permute.xlu2 %v1413_v9 }
  0x28   : > { %626 = vperm.xlu2 %1306, %v528_v8   ;;  %732 = vperm.xlu0 %1311, %v729_v4  }
  0x2f   : > { %548 = vperm.xlu1 %1302, %v528_v8  }
  0x30   : > { %1307 = vset.pattern.permute.xlu2 %v1414_v10  ;;  %1314 = vset.pattern.permute.xlu0 %v1411_v5 }
  0x31   : > { %650 = vperm.xlu2 %1307, %v528_v8   ;;  %860 = vperm.xlu0 %1314, %v1568_v41  }
  0x37   : > { %1303 = vset.pattern.permute.xlu1 %v1411_v5 }
  0x38   : > { %570 = vperm.xlu1 %1303, %v528_v8  }
  0x39   : > { %1308 = vset.pattern.permute.xlu2 %v1415_v11  ;;  %1318 = vset.pattern.permute.xlu0 %v1410_v2 }
  0x3a   : > { %674 = vperm.xlu2 %1308, %v528_v8  }
  0x40   : > { %1304 = vset.pattern.permute.xlu1 %v1410_v2 }
  0x41   : > { %594 = vperm.xlu1 %1304, %v528_v8  }
  0x42   : > { %1309 = vset.pattern.permute.xlu2 %v1416_v15 }
  0x43   : > { %698 = vperm.xlu2 %1309, %v528_v8  }
  0x49   : > { %1305 = vset.pattern.permute.xlu1 %v1412_v6 }
  0x4a   : > { %618 = vperm.xlu1 %1305, %v528_v8  }
  0x4b   : > { %1310 = vset.pattern.permute.xlu2 %v1417_v38 }
  0x4c   : > { %722 = vperm.xlu2 %1310, %v528_v8  }
  0x52   : > { %1312 = vset.pattern.permute.xlu1 %v1409_v1 }
  0x53   : > { %831 = vperm.xlu1 %1312, %v1568_v41  }
  0x54   : > { %1313 = vset.pattern.permute.xlu2 %v1409_v1 }
  0x55   : > { %836 = vperm.xlu2 %1313, %v1579_v53  }
  0x5b   : > { %841 = vperm.xlu1 %1312, %v1584_v54  }
  0x5d   : > { %846 = vperm.xlu2 %1313, %v1601_v3  }
  0x63   : > { %1315 = vset.pattern.permute.xlu1 %v1411_v5 }
  0x64   : > { %864 = vperm.xlu1 %1315, %v1579_v53  }
  0x65   : > { %1316 = vset.pattern.permute.xlu2 %v1411_v5 }
  0x66   : > { %868 = vperm.xlu2 %1316, %v1584_v54  }
  0x6c   : > { %872 = vperm.xlu1 %1315, %v1601_v3  }
  0x6e   : > { %1317 = vset.pattern.permute.xlu2 %v1410_v2 }
  0x71   : > { %v420_v50 = vpop.permute.xlu2 %419 }
  0x74   : > { %1319 = vset.pattern.permute.xlu1 %v1410_v2 }
  0x87   : > { %v363_v13 = vpop.permute.xlu0 %362  ;;  %v390_v14 = vpop.permute.xlu1 %389 }
  0x88   : > { %v372_v34 = vmul.f32 %v370_v24, %v363_v13  ;;  %v373_v35 = vmul.f32 %v371_v25, %v363_v13  ;;  %v398_v39 = vmul.f32 %v396_v28, %v390_v14  ;;  %v399_v40 = vmul.f32 %v397_v29, %v390_v14 }
  0x90   : > { %v376_v32 = vpop.permute.xlu0 %375  ;;  %v404_v33 = vpop.permute.xlu1 %403 }
  0x91   : > { %v384_v36 = vmul.f32 %v382_v26, %v376_v32  ;;  %v385_v37 = vmul.f32 %v383_v27, %v376_v32  ;;  %v412_v44 = vmul.f32 %v410_v30, %v404_v33  ;;  %v413_v45 = vmul.f32 %v411_v31, %v404_v33 }
  0x93   : > { %v386_v42 = vadd.f32 %v384_v36, %v372_v34  ;;  %v387_v43 = vadd.f32 %v385_v37, %v373_v35 }
  0x95   : > { %v400_v46 = vadd.f32 %v398_v39, %v386_v42  ;;  %v401_v47 = vadd.f32 %v399_v40, %v387_v43 }
  0x97   : > { %v414_v48 = vadd.f32 %v412_v44, %v400_v46  ;;  %v415_v49 = vadd.f32 %v413_v45, %v401_v47 }
  0x99   : > { %v1571_v51 = vadd.f32 %v420_v50, %v414_v48  ;;  %v1573_v52 = vadd.f32 %v420_v50, %v415_v49 }
  0x9b   : > { %v1587_v55 = vmul.f32 0.70710677, %v1571_v51  ;;  %v1590_v56 = vmul.f32 0.70710677, %v1573_v52 }
  0x9d   : > { %v428_v57 = vmul.f32 %v1587_v55, %v1587_v55  ;;  %v468_v58 = vmul.f32 %v1590_v56, %v1590_v56 }
  0x9f   : > { %v429_v59 = vmin.f32 %v428_v57, 16.0  ;;  %v469_v60 = vmin.f32 %v468_v58, 16.0 }
  0xa1   : > { %v430_v61 = vmul.f32 2.1237322e-06, %v429_v59  ;;  %v441_v62 = vmul.f32 3.8918573e-05, %v429_v59  ;;  %v470_v63 = vmul.f32 2.1237322e-06, %v469_v60 }
  0xa2   : > { %v481_v0 = vmul.f32 3.8918573e-05, %v469_v60 }
  0xa3   : > { %v431_v7 = vadd.f32 0.00028619796, %v430_v61  ;;  %v442_v8 = vadd.f32 0.001143296, %v441_v62  ;;  %v471_v12 = vadd.f32 0.00028619796, %v470_v63 }
  0xa4   : > { %v482_v13 = vadd.f32 0.001143296, %v481_v0 }
  0xa5   : > { %v432_v14 = vmul.f32 %v431_v7, %v429_v59  ;;  %v443_v16 = vmul.f32 %v442_v8, %v429_v59  ;;  %v472_v17 = vmul.f32 %v471_v12, %v469_v60 }
  0xa6   : > { %v483_v18 = vmul.f32 %v482_v13, %v469_v60 }
  0xa7   : > { %v433_v19 = vadd.f32 0.0036580483, %v432_v14  ;;  %v444_v20 = vadd.f32 0.014752088, %v443_v16  ;;  %v473_v23 = vadd.f32 0.0036580483, %v472_v17 }
  0xa8   : > { %v484_v21 = vadd.f32 0.014752088, %v483_v18 }
  0xa9   : > { %v445_v22 = vmul.f32 %v444_v20, %v429_v59  ;;  %v434_v25 = vmul.f32 %v433_v19, %v429_v59  ;;  %v474_v29 = vmul.f32 %v473_v23, %v469_v60  ;;  %v516_v20 = vpop.permute.xlu2 %515 }
  0xaa   : > { %v485_v24 = vmul.f32 %v484_v21, %v469_v60 }
  0xab   : > { %v446_v26 = vadd.f32 0.112945676, %v445_v22  ;;  %v435_v31 = vadd.f32 0.05243302, %v434_v25  ;;  %v475_v35 = vadd.f32 0.05243302, %v474_v29 }
  0xac   : > { %v486_v27 = vadd.f32 0.112945676, %v485_v24  ;;  %v424_v24 = vmul.f32 0.5, %v1571_v51 }
  0xad   : > { %v447_v28 = vmul.f32 %v446_v26, %v429_v59  ;;  %v436_v37 = vmul.f32 %v435_v31, %v429_v59  ;;  %v476_v5 = vmul.f32 %v475_v35, %v469_v60  ;;  %v524_v31 = vpop.permute.xlu1 %523 }
  0xae   : > { %v487_v30 = vmul.f32 %v486_v27, %v469_v60 }
  0xaf   : > { %v448_v32 = vadd.f32 0.4994258, %v447_v28  ;;  %v437_v40 = vadd.f32 0.18741608, %v436_v37  ;;  %v477_v42 = vadd.f32 0.18741608, %v476_v5 }
  0xb0   : > { %v488_v33 = vadd.f32 0.4994258, %v487_v30 }
  0xb1   : > { %v449_v34 = vmul.f32 %v448_v32, %v429_v59  ;;  %v438_v44 = vmul.f32 %v437_v40, %v429_v59  ;;  %v478_v47 = vmul.f32 %v477_v42, %v469_v60 }
  0xb2   : > { %v489_v36 = vmul.f32 %v488_v33, %v469_v60 }
  0xb3   : > { %v450_v38 = vadd.f32 1.0, %v449_v34  ;;  %v439_v50 = vadd.f32 1.1283791, %v438_v44  ;;  %v479_v0 = vadd.f32 1.1283791, %v478_v47 }
  0xb4   : > { %v490_v39 = vadd.f32 1.0, %v489_v36 }
  0xb5   : > { %1337 = vrcp.f32 %v450_v38  ;;  %v462_v57 = vand.u32 2147483648, %v450_v38  ;;  %v460_v62 = vand.u32 2147483647, %v450_v38  ;;  %vm456_vm2 = vweird.f32 %v450_v38  ;;  %v1639_v36 = vpop.permute.xlu1 %548 }
  0xb6   : > { %1339 = vrcp.f32 %v490_v39  ;;  %v502_v63 = vand.u32 2147483648, %v490_v39  ;;  %v500_v2 = vand.u32 2147483647, %v490_v39  ;;  %vm496_vm4 = vweird.f32 %v490_v39 }
  0xb7   : > { %v463_v59 = vor.u32 1.1754944e-38, %v462_v57  ;;  %v440_v60 = vmul.f32 %v439_v50, %v1587_v55  ;;  %vm461_vm5 = vcmp.eq.f32.partialorder %v460_v62, 8.507059e+37  ;;  %v480_v16 = vmul.f32 %v479_v0, %v1590_v56  ;;  %v627_v56 = vpop.permute.xlu2 %626 }
  0xb8   : > { %v503_v13 = vor.u32 1.1754944e-38, %v502_v63  ;;  %vm501_vm7 = vcmp.eq.f32.partialorder %v500_v2, 8.507059e+37  ;;  %v425_v55 = vmul.f32 0.5, %v1573_v52 }
  0xbb   : > { %v1338_v43 = vpop.eup %1337 }
  0xbc   : > { %v1340_v45 = vpop.eup %1339  ;;  %v452_v46 = vmul.f32 %v1338_v43, %v450_v38  ;;  %vm457_vm0 = vweird.f32 %v1338_v43 }
  0xbd   : > { %v492_v48 = vmul.f32 %v1340_v45, %v490_v39  ;;  %vm497_vm1 = vweird.f32 %v1340_v45  ;;  %vm458_vm3 = vmor %vm456_vm2, %vm457_vm0  ;;  %v1647_v38 = vpop.permute.xlu1 %570 }
  0xbe   : > { %v453_v49 = vsub.f32 1.0, %v452_v46  ;;  %vm498_vm6 = vmor %vm496_vm4, %vm497_vm1  ;;  %v1099_v46 = vld [vmem:[%s2030_s9 + $0x10] sm:$0xff] }
  0xbf   : > { %v493_v58 = vsub.f32 1.0, %v492_v48  ;;  %v1630_v51 = vpop.permute.xlu2 %650 }
  0xc0   : > { %v454_v61 = vmul.f32 %v1338_v43, %v453_v49  ;;  %v533_v49 = vlaneseq }
  0xc1   : > { %v494_v4 = vmul.f32 %v1340_v45, %v493_v58  ;;  %v1224_v58 = vld [vmem:[%s2028_s7 + $0x1] ss:$8 sm:$0x3] }
  0xc2   : > { %v455_v7 = vadd.f32 %v1338_v43, %v454_v61  ;;  %v1711_v57 = vand.u32 127, %v533_v49  ;;  %v1225_v61 = vld [vmem:[%s2028_s7 + $0x2] ss:$8 sm:$0x3]  ;;  %v563_v63 = vperm.slane %v1224_v58, 0  ;;  %v564_v0 = vperm.slane %v1224_v58, 1 }
  0xc3   : > { %v495_v8 = vadd.f32 %v1340_v45, %v494_v4 }
  0xc4   : > { %v459_v12 = vsel %vm458_vm3, %v1338_v43, %v455_v7  ;;  %vm557_vm8 = vcmp.lt.s32.totalorder %v1711_v57, 16  ;;  %vm535_vm9 = vcmp.lt.s32.totalorder %v1711_v57, 17  ;;  %vm581_vm10 = vcmp.lt.s32.totalorder %v1711_v57, 15 }
  0xc5   : > { %v464_v14 = vsel %vm461_vm5, %v463_v59, %v459_v12  ;;  %v499_v17 = vsel %vm498_vm6, %v1340_v45, %v495_v8  ;;  %v1655_v5 = vpop.permute.xlu1 %594  ;;  %v1097_v45 = vld [vmem:[%s2030_s9] sm:$0xff]  ;;  %v588_v12 = vperm.slane %v1225_v61, 1  ;;  %vm605_vm11 = vcmp.lt.s32.totalorder %v1711_v57, 1 }
  0xc6   : > { %v465_v18 = vmul.f32 %v464_v14, %v440_v60  ;;  %v504_v19 = vsel %vm501_vm7, %v503_v13, %v499_v17  ;;  %v587_v60 = vperm.slane %v1225_v61, 0  ;;  %vm637_vm12 = vcmp.lt.s32.totalorder %v1711_v57, 127 }
  0xc7   : > { %v505_v21 = vmul.f32 %v504_v19, %v480_v16  ;;  %v1635_v52 = vpop.permute.xlu2 %674  ;;  %vm661_vm13 = vcmp.lt.s32.totalorder %v1711_v57, 113  ;;  %vm685_vm14 = vcmp.lt.s32.totalorder %v1711_v57, 112  ;;  %vm709_vm15 = vcmp.lt.s32.totalorder %v1711_v57, 111 }
  0xc8   : > { %v1222_v22 = vclamps-f32 %v465_v18, 1.0 }
  0xc9   : > { %v1223_v23 = vclamps-f32 %v505_v21, 1.0  ;;  %v1226_v21 = vld [vmem:[%s2028_s7 + $0x3] ss:$8 sm:$0x3] }
  0xca   : > { %v508_v25 = vadd.f32 1.0, %v1222_v22 }
  0xcb   : > { %v509_v26 = vadd.f32 1.0, %v1223_v23 }
  0xcc   : > { %v510_v27 = vmul.f32 %v508_v25, %v424_v24 }
  0xcd   : > { %v511_v28 = vmul.f32 %v509_v26, %v425_v55  ;;  %v1664_v42 = vpop.permute.xlu1 %618 }
  0xce   : > { %v518_v29 = vmul.f32 %v516_v20, %v510_v27  ;;  %v611_v27 = vperm.slane %v1226_v21, 0 }
  0xcf   : > { %v519_v30 = vmul.f32 %v516_v20, %v511_v28  ;;  %v1644_v37 = vpop.permute.xlu2 %698  ;;  %v612_v28 = vperm.slane %v1226_v21, 1 }
  0xd0   : > { %v526_v32 = vadd.f32 %v524_v31, %v518_v29 }
  0xd1   : > { %v527_v33 = vadd.f32 %v524_v31, %v519_v30 }
  0xd2   : > { %v1621_v34 = vmul.f32 %v627_v56, %v526_v32  ;;  %529 = vrot.lane.b32.xlu2 %v526_v32, %s1418_s28 }
  0xd3   : > { %v1623_v35 = vmul.f32 %v627_v56, %v527_v33  ;;  %635 = vrot.lane.b32.xlu1 %v527_v33, %s1419_s29  ;;  %531 = vrot.lane.b32.xlu0 %v527_v33, %s1418_s28 }
  0xd5   : > { %v1673_v43 = vpop.permute.xlu1 %831 }
  0xd7   : > { %v1653_v39 = vpop.permute.xlu2 %722 }
  0xda   : > { %553 = vrot.lane.b32.xlu2 %v526_v32, %s2032_s30 }
  0xdb   : > { %659 = vrot.lane.b32.xlu1 %v527_v33, %s1421_s11  ;;  %555 = vrot.lane.b32.xlu0 %v527_v33, %s2032_s30 }
  0xdd   : > { %v1686_v44 = vpop.permute.xlu1 %841 }
  0xdf   : > { %v1662_v40 = vpop.permute.xlu2 %836 }
  0xe2   : > { %577 = vrot.lane.b32.xlu2 %v526_v32, %s1422_s12 }
  0xe3   : > { %683 = vrot.lane.b32.xlu1 %v527_v33, %s1423_s18  ;;  %579 = vrot.lane.b32.xlu0 %v527_v33, %s1422_s12  ;;  %s1239_s12 = sshll.u32 %s1503_s17, 6 }
  0xea   : > { %601 = vrot.lane.b32.xlu2 %v526_v32, %s1424_s20 }
  0xeb   : > { %902 = vperm.xlu1 %1319, %v1584_v54   ;;  %603 = vrot.lane.b32.xlu0 %v527_v33, %s1424_s20  ;;  %s1365_s20 = scalar_lea.hbm %s2031_s10, 128 }
  0xf2   : > { %894 = vperm.xlu2 %1317, %v1568_v41  }
  0xf3   : > { %707 = vrot.lane.b32.xlu1 %v527_v33, %s1425_s21  ;;  %633 = vrot.lane.b32.xlu0 %v526_v32, %s1419_s29  ;;  %s350_s29 = sand.u32 1, %s1399_s14  }
  0xf4   : > { %1320 = vset.pattern.permute.xlu1 %v1412_v6  ;;  %s1138_s27 = scalar_lea.sflag [#allocation3], %s350_s29 }
  0xfa   : > { %906 = vperm.xlu2 %1317, %v1601_v3  }
  0xfb   : > { %657 = vrot.lane.b32.xlu0 %v526_v32, %s1421_s11  ;;  %928 = vperm.xlu1 %1320, %v1568_v41   ;;  %s1219_s11 = sshll.u32 %s350_s29, 6 }
  0xfc   : > { %s352_s25 = scalar_lea.vmem [#allocation2], %s1219_s11 }
  0xfd   : > { %s1150_s17 = sshll.u32 %s352_s25, 4  ;;  %s1151_s17 = int_to_ptr.vmem [resolvable:$true] %s1150_s17 }
 0x102   : > { %1321 = vset.pattern.permute.xlu2 %v1412_v6 }
 0x103   : > { %681 = vrot.lane.b32.xlu0 %v526_v32, %s1423_s18  ;;  %940 = vperm.xlu1 %1320, %v1601_v3  }
 0x104   : > { %932 = vperm.xlu2 %1321, %v1579_v53  }
 0x10b   : > { %705 = vrot.lane.b32.xlu0 %v526_v32, %s1425_s21  ;;  %1324 = vset.pattern.permute.xlu1 %v1413_v9  ;;  %s1149_s21 = scalar_lea.hbm %s2031_s10, %s1239_s12 }
 0x10c   : > { %966 = vperm.xlu1 %1324, %v1579_v53   ;;  %1323 = vset.pattern.permute.xlu2 %v1413_v9  ;;  %s1152_s26 = sshll.u32 %s1149_s21, 4  ;;  %s1153_s26 = int_to_ptr.hbm [resolvable:$true] %s1152_s26 }
 0x10d   : > { %962 = vperm.xlu2 %1323, %v1568_v41   ;;  %s1359_s28 = sshra.s32 %s1153_s26, 4  ;;  %s1360_s28 = int_to_ptr.hbm [resolvable:$true] %s1359_s28 }
 0x10e   : > { %s1361_s11 = scalar_lea.hbm %s1360_s28, 64  ;;  %p1366_p0 = scmp.lt.s32.totalorder %s1360_s28, %s2031_s10 }
 0x10f   : > { %p1362_p11 = scmp.ne.s32.totalorder %s1360_s28, %s1361_s11  ;;  %p1367_p1 = scmp.lt.s32.totalorder %s1365_s20, %s1361_s11 }
 0x111   : > { %p1363_p12 = pnand %p1362_p11, %p1520_p5  ;;  %p1368_p2 = por %p1367_p1, %p1366_p0 }
 0x113   : > { %898 = vperm.xlu0 %1318, %v1579_v53   ;;  %p1364_p13 = pneg %p1363_p12 }
 0x114   : > { %1326 = vset.pattern.permute.xlu1 %v1414_v10 }
 0x115   : > { %996 = vperm.xlu1 %1326, %v1568_v41   ;;  %970 = vperm.xlu2 %1323, %v1584_v54   ;;  %p1369_p3 = pnand %p1368_p2, %p1364_p13 }
 0x11b   : > { %1322 = vset.pattern.permute.xlu0 %v1412_v6  ;;  %v1671_v6 = vpop.permute.xlu2 %846 }
 0x11c   : > { %936 = vperm.xlu0 %1322, %v1584_v54  }
 0x11d   : > { %1004 = vperm.xlu1 %1326, %v1584_v54   ;;  %1327 = vset.pattern.permute.xlu2 %v1414_v10 }
 0x11e   : > { %1000 = vperm.xlu2 %1327, %v1579_v53  }
 0x123   : > { %v1682_v10 = vpop.permute.xlu2 %868 }
 0x124   : > { %1325 = vset.pattern.permute.xlu0 %v1413_v9  ;;  %v1680_v9 = vpop.permute.xlu0 %732 }
 0x125   : > { %1329 = vset.pattern.permute.xlu1 %v1415_v11  ;;  %974 = vperm.xlu0 %1325, %v1601_v3  }
 0x126   : > { %1034 = vperm.xlu1 %1329, %v1579_v53   ;;  %1008 = vperm.xlu2 %1327, %v1601_v3  }
 0x12c   : > { %v530_v47 = vpop.permute.xlu2 %529 }
 0x12d   : > { %1328 = vset.pattern.permute.xlu0 %v1415_v11 }
 0x12e   : > { %1042 = vperm.xlu1 %1329, %v1601_v3   ;;  %1030 = vperm.xlu0 %1328, %v1568_v41  }
 0x12f   : > { %1330 = vset.pattern.permute.xlu2 %v1415_v11  ;;  %v1692_v11 = vpop.permute.xlu0 %860 }
 0x130   : > { %1038 = vperm.xlu2 %1330, %v1584_v54  }
 0x136   : > { %1333 = vset.pattern.permute.xlu1 %v1416_v15  ;;  %1332 = vset.pattern.permute.xlu0 %v1416_v15 }
 0x137   : > { %1072 = vperm.xlu1 %1333, %v1584_v54   ;;  %1068 = vperm.xlu0 %1332, %v1579_v53   ;;  %v1100_v53 = vld [vmem:[%s2030_s9 + $0x18] sm:$0xff]  ;;  %v554_v54 = vpop.permute.xlu2 %553 }
 0x138   : > { %1331 = vset.pattern.permute.xlu2 %v1416_v15  ;;  %v1702_v15 = vpop.permute.xlu1 %864 }
 0x139   : > { %1064 = vperm.xlu2 %1331, %v1568_v41  }
 0x13f   : > { %1334 = vset.pattern.permute.xlu1 %v1409_v1  ;;  %1336 = vset.pattern.permute.xlu0 %v1409_v1  ;;  %v578_v62 = vpop.permute.xlu2 %577 }
 0x140   : > { %1103 = vperm.xlu1 %1334, %v1097_v45   ;;  %1113 = vperm.xlu0 %1336, %v1099_v46   ;;  %v1709_v48 = vpop.permute.xlu1 %872 }
 0x141   : > { %1076 = vperm.xlu2 %1331, %v1601_v3   ;;  %v1098_v3 = vld [vmem:[%s2030_s9 + $0x8] sm:$0xff] }
 0x145   : > { %v532_v41 = vpop.permute.xlu0 %531 }
 0x146   : > { %v536_v14 = vsel %vm535_vm9, %v530_v47, %v532_v41  ;;  %v537_v16 = vsel %vm535_vm9, %v532_v41, %v530_v47 }
 0x147   : > { %v602_v31 = vpop.permute.xlu2 %601 }
 0x148   : > { %1118 = vperm.xlu1 %1334, %v1100_v53   ;;  %v636_v7 = vpop.permute.xlu1 %635 }
 0x149   : > { %1335 = vset.pattern.permute.xlu2 %v1409_v1  ;;  %v538_v1 = vld [vmem:[%s2028_s7] ss:$8 sm:$0x3] }
 0x14a   : > { %1108 = vperm.xlu2 %1335, %v1098_v3   ;;  %v540_v59 = vperm.slane %v538_v1, 0  ;;  %v541_v8 = vperm.slane %v538_v1, 1 }
 0x14c   : > { %v544_v22 = vmul.f32 %v540_v59, %v537_v16  ;;  %v545_v23 = vmul.f32 %v541_v8, %v536_v14 }
 0x14d   : > { %v556_v50 = vpop.permute.xlu0 %555 }
 0x14e   : > { %v558_v4 = vsel %vm557_vm8, %v554_v54, %v556_v50  ;;  %v559_v2 = vsel %vm557_vm8, %v556_v50, %v554_v54  ;;  %v551_v29 = vmul.f32 %v1639_v36, %v544_v22  ;;  %v552_v30 = vmul.f32 %v1639_v36, %v545_v23 }
 0x14f   : > { %v567_v19 = vmul.f32 %v563_v63, %v559_v2  ;;  %v568_v20 = vmul.f32 %v564_v0, %v558_v4  ;;  %v1227_v4 = vld [vmem:[%s2028_s7 + $0x5] ss:$8 sm:$0x3]  ;;  %v1228_v2 = vld [vmem:[%s2028_s7 + $0x6] ss:$8 sm:$0x3] }
 0x150   : > { %v660_v47 = vpop.permute.xlu1 %659  ;;  %v644_v59 = vperm.slane %v1227_v4, 1 }
 0x151   : > { %v573_v55 = vmul.f32 %v1647_v38, %v567_v19  ;;  %v574_v26 = vmul.f32 %v1647_v38, %v568_v20 }
 0x153   : > { %v575_v41 = vadd.f32 %v573_v55, %v551_v29  ;;  %v576_v53 = vadd.f32 %v574_v26, %v552_v30 }
 0x155   : > { %v580_v13 = vpop.permute.xlu0 %579 }
 0x156   : > { %v582_v17 = vsel %vm581_vm10, %v578_v62, %v580_v13  ;;  %v583_v18 = vsel %vm581_vm10, %v580_v13, %v578_v62  ;;  %v668_v13 = vperm.slane %v1228_v2, 1 }
 0x157   : > { %v591_v24 = vmul.f32 %v587_v60, %v583_v18  ;;  %v592_v25 = vmul.f32 %v588_v12, %v582_v17  ;;  %v667_v12 = vperm.slane %v1228_v2, 0 }
 0x158   : > { %v684_v63 = vpop.permute.xlu1 %683 }
 0x159   : > { %v597_v56 = vmul.f32 %v1655_v5, %v591_v24  ;;  %v598_v32 = vmul.f32 %v1655_v5, %v592_v25  ;;  %v1230_v25 = vld [vmem:[%s2028_s7 + $0x10] ss:$8 sm:$0x3] }
 0x15b   : > { %v599_v38 = vadd.f32 %v597_v56, %v575_v41  ;;  %v600_v50 = vadd.f32 %v598_v32, %v576_v53  ;;  %v716_v56 = vperm.slane %v1230_v25, 1 }
 0x15d   : > { %v604_v33 = vpop.permute.xlu0 %603 }
 0x15e   : > { %v606_v45 = vsel %vm605_vm11, %v602_v31, %v604_v33  ;;  %v607_v46 = vsel %vm605_vm11, %v604_v33, %v602_v31  ;;  %v715_v31 = vperm.slane %v1230_v25, 0 }
 0x15f   : > { %v615_v54 = vmul.f32 %v611_v27, %v607_v46  ;;  %v616_v49 = vmul.f32 %v612_v28, %v606_v45 }
 0x160   : > { %v1753_v60 = vpop.permute.xlu1 %902 }
 0x161   : > { %v621_v58 = vmul.f32 %v1664_v42, %v615_v54  ;;  %v622_v3 = vmul.f32 %v1664_v42, %v616_v49  ;;  %v643_v42 = vperm.slane %v1227_v4, 0 }
 0x163   : > { %v623_v36 = vadd.f32 %v621_v58, %v599_v38  ;;  %v624_v1 = vadd.f32 %v622_v3, %v600_v50  ;;  %v1766_v38 = vpop.permute.xlu2 %894 }
 0x165   : > { %v634_v61 = vpop.permute.xlu0 %633  ;;  %v631_v62 = vadd.f32 %v1621_v34, %v623_v36  ;;  %v632_v5 = vadd.f32 %v1623_v35, %v624_v1  ;;  %v1229_v35 = vld [vmem:[%s2028_s7 + $0x7] ss:$8 sm:$0x3] }
 0x166   : > { %v638_v8 = vsel %vm637_vm12, %v634_v61, %v636_v7  ;;  %v639_v34 = vsel %vm637_vm12, %v636_v7, %v634_v61  ;;  %v691_v19 = vperm.slane %v1229_v35, 0  ;;  %v692_v20 = vperm.slane %v1229_v35, 1 }
 0x167   : > { %v647_v17 = vmul.f32 %v643_v42, %v638_v8  ;;  %v648_v18 = vmul.f32 %v644_v59, %v639_v34 }
 0x168   : > { %v708_v32 = vpop.permute.xlu1 %707 }
 0x169   : > { %v653_v55 = vmul.f32 %v1630_v51, %v647_v17  ;;  %v654_v26 = vmul.f32 %v1630_v51, %v648_v18 }
 0x16b   : > { %v655_v33 = vadd.f32 %v653_v55, %v631_v62  ;;  %v656_v45 = vadd.f32 %v654_v26, %v632_v5  ;;  %v1784_v4 = vpop.permute.xlu2 %906 }
 0x16d   : > { %v658_v0 = vpop.permute.xlu0 %657 }
 0x16e   : > { %v662_v14 = vsel %vm661_vm13, %v658_v0, %v660_v47  ;;  %v663_v16 = vsel %vm661_vm13, %v660_v47, %v658_v0 }
 0x16f   : > { %v671_v7 = vmul.f32 %v667_v12, %v662_v14  ;;  %v672_v24 = vmul.f32 %v668_v13, %v663_v16 }
 0x170   : > { %v1776_v5 = vpop.permute.xlu1 %928 }
 0x171   : > { %v677_v29 = vmul.f32 %v1635_v52, %v671_v7  ;;  %v678_v30 = vmul.f32 %v1635_v52, %v672_v24 }
 0x173   : > { %v679_v54 = vadd.f32 %v677_v29, %v655_v33  ;;  %v680_v49 = vadd.f32 %v678_v30, %v656_v45 }
 0x175   : > { %v682_v21 = vpop.permute.xlu0 %681 }
 0x176   : > { %v686_v22 = vsel %vm685_vm14, %v682_v21, %v684_v63  ;;  %v687_v23 = vsel %vm685_vm14, %v684_v63, %v682_v21  ;;  %v1792_v21 = vpop.permute.xlu2 %932 }
 0x177   : > { %v695_v27 = vmul.f32 %v691_v19, %v686_v22  ;;  %v696_v28 = vmul.f32 %v692_v20, %v687_v23 }
 0x178   : > { %v1790_v17 = vpop.permute.xlu1 %940 }
 0x179   : > { %v701_v46 = vmul.f32 %v1644_v37, %v695_v27  ;;  %v702_v47 = vmul.f32 %v1644_v37, %v696_v28 }
 0x17b   : > { %v703_v58 = vadd.f32 %v701_v46, %v679_v54  ;;  %v704_v52 = vadd.f32 %v702_v47, %v680_v49 }
 0x17d   : > { %v706_v41 = vpop.permute.xlu0 %705 }
 0x17e   : > { %v710_v53 = vsel %vm709_vm15, %v706_v41, %v708_v32  ;;  %v711_v51 = vsel %vm709_vm15, %v708_v32, %v706_v41  ;;  %v1796_v46 = vpop.permute.xlu2 %962 }
 0x17f   : > { %v719_v57 = vmul.f32 %v715_v31, %v710_v53  ;;  %v720_v50 = vmul.f32 %v716_v56, %v711_v51 }
 0x180   : > { %v1794_v30 = vpop.permute.xlu1 %966 }
 0x181   : > { %v725_v3 = vmul.f32 %v1653_v39, %v719_v57  ;;  %v726_v36 = vmul.f32 %v1653_v39, %v720_v50 }
 0x183   : > { %v727_v1 = vadd.f32 %v725_v3, %v703_v58  ;;  %v728_v61 = vadd.f32 %v726_v36, %v704_v52 }
 0x185   : > { %v1771_v62 = vadd.f32 %v1680_v9, %v727_v1  ;;  %v1774_v37 = vadd.f32 %v1680_v9, %v728_v61 }
 0x186   : > { %v1800_v36 = vpop.permute.xlu2 %970 }
 0x187   : > { %v1779_v63 = vmul.f32 0.70710677, %v1771_v62  ;;  %v1782_v0 = vmul.f32 0.70710677, %v1774_v37 }
 0x188   : > { %v1798_v58 = vpop.permute.xlu1 %996 }
 0x189   : > { %v741_v39 = vmul.f32 %v1779_v63, %v1779_v63  ;;  %v781_v2 = vmul.f32 %v1782_v0, %v1782_v0 }
 0x18b   : > { %v742_v42 = vmin.f32 %v741_v39, 16.0  ;;  %v782_v59 = vmin.f32 %v781_v2, 16.0 }
 0x18d   : > { %v743_v9 = vmul.f32 2.1237322e-06, %v742_v42  ;;  %v754_v8 = vmul.f32 3.8918573e-05, %v742_v42  ;;  %v783_v34 = vmul.f32 2.1237322e-06, %v782_v59 }
 0x18e   : > { %v794_v35 = vmul.f32 3.8918573e-05, %v782_v59 }
 0x18f   : > { %v744_v12 = vadd.f32 0.00028619796, %v743_v9  ;;  %v755_v13 = vadd.f32 0.001143296, %v754_v8  ;;  %v784_v14 = vadd.f32 0.00028619796, %v783_v34  ;;  %v1802_v34 = vpop.permute.xlu0 %898 }
 0x190   : > { %v795_v16 = vadd.f32 0.001143296, %v794_v35 }
 0x191   : > { %v745_v18 = vmul.f32 %v744_v12, %v742_v42  ;;  %v756_v19 = vmul.f32 %v755_v13, %v742_v42  ;;  %v785_v20 = vmul.f32 %v784_v14, %v782_v59 }
 0x192   : > { %v796_v22 = vmul.f32 %v795_v16, %v782_v59 }
 0x193   : > { %v746_v23 = vadd.f32 0.0036580483, %v745_v18  ;;  %v757_v7 = vadd.f32 0.014752088, %v756_v19  ;;  %v786_v55 = vadd.f32 0.0036580483, %v785_v20  ;;  %v1804_v20 = vpop.permute.xlu1 %1004 }
 0x194   : > { %v797_v24 = vadd.f32 0.014752088, %v796_v22 }
 0x195   : > { %v758_v25 = vmul.f32 %v757_v7, %v742_v42  ;;  %v747_v27 = vmul.f32 %v746_v23, %v742_v42  ;;  %v787_v56 = vmul.f32 %v786_v55, %v782_v59 }
 0x196   : > { %v798_v26 = vmul.f32 %v797_v24, %v782_v59 }
 0x197   : > { %v759_v28 = vadd.f32 0.112945676, %v758_v25  ;;  %v748_v33 = vadd.f32 0.05243302, %v747_v27  ;;  %v788_v53 = vadd.f32 0.05243302, %v787_v56  ;;  %v1806_v25 = vpop.permute.xlu2 %1000 }
 0x198   : > { %v799_v29 = vadd.f32 0.112945676, %v798_v26 }
 0x199   : > { %v760_v31 = vmul.f32 %v759_v28, %v742_v42  ;;  %v749_v54 = vmul.f32 %v748_v33, %v742_v42  ;;  %v789_v50 = vmul.f32 %v788_v53, %v782_v59  ;;  %v737_v53 = vmul.f32 0.5, %v1771_v62 }
 0x19a   : > { %v800_v32 = vmul.f32 %v799_v29, %v782_v59 }
 0x19b   : > { %v761_v45 = vadd.f32 0.4994258, %v760_v31  ;;  %v750_v52 = vadd.f32 0.18741608, %v749_v54  ;;  %v790_v3 = vadd.f32 0.18741608, %v789_v50 }
 0x19c   : > { %v801_v47 = vadd.f32 0.4994258, %v800_v32  ;;  %v738_v54 = vmul.f32 0.5, %v1774_v37 }
 0x19d   : > { %v762_v41 = vmul.f32 %v761_v45, %v742_v42  ;;  %v751_v61 = vmul.f32 %v750_v52, %v742_v42  ;;  %v791_v9 = vmul.f32 %v790_v3, %v782_v59  ;;  %v1810_v45 = vpop.permute.xlu0 %936 }
 0x19e   : > { %v802_v51 = vmul.f32 %v801_v47, %v782_v59 }
 0x19f   : > { %v763_v49 = vadd.f32 1.0, %v762_v41  ;;  %v752_v12 = vadd.f32 1.1283791, %v751_v61  ;;  %v792_v22 = vadd.f32 1.1283791, %v791_v9  ;;  %v1820_v50 = vpop.permute.xlu2 %1008 }
 0x1a0   : > { %v803_v57 = vadd.f32 1.0, %v802_v51 }
 0x1a1   : > { %1341 = vrcp.f32 %v763_v49  ;;  %v775_v13 = vand.u32 2147483648, %v763_v49  ;;  %v773_v18 = vand.u32 2147483647, %v763_v49  ;;  %vm769_vm2 = vweird.f32 %v763_v49 }
 0x1a2   : > { %1343 = vrcp.f32 %v803_v57  ;;  %v815_v19 = vand.u32 2147483648, %v803_v57  ;;  %v813_v42 = vand.u32 2147483647, %v803_v57  ;;  %vm809_vm4 = vweird.f32 %v803_v57 }
 0x1a3   : > { %v776_v59 = vor.u32 1.1754944e-38, %v775_v13  ;;  %v753_v55 = vmul.f32 %v752_v12, %v1779_v63  ;;  %vm774_vm5 = vcmp.eq.f32.partialorder %v773_v18, 8.507059e+37  ;;  %v793_v29 = vmul.f32 %v792_v22, %v1782_v0  ;;  %v1813_v63 = vpop.permute.xlu1 %1034 }
 0x1a4   : > { %v816_v27 = vor.u32 1.1754944e-38, %v815_v19  ;;  %vm814_vm7 = vcmp.eq.f32.partialorder %v813_v42, 8.507059e+37 }
 0x1a7   : > { %v1342_v1 = vpop.eup %1341 }
 0x1a8   : > { %v1344_v39 = vpop.eup %1343  ;;  %v765_v2 = vmul.f32 %v1342_v1, %v763_v49  ;;  %vm770_vm0 = vweird.f32 %v1342_v1 }
 0x1a9   : > { %v805_v8 = vmul.f32 %v1344_v39, %v803_v57  ;;  %vm810_vm1 = vweird.f32 %v1344_v39  ;;  %vm771_vm3 = vmor %vm769_vm2, %vm770_vm0 }
 0x1aa   : > { %v766_v35 = vsub.f32 1.0, %v765_v2  ;;  %vm811_vm6 = vmor %vm809_vm4, %vm810_vm1 }
 0x1ab   : > { %v806_v14 = vsub.f32 1.0, %v805_v8 }
 0x1ac   : > { %v767_v16 = vmul.f32 %v1342_v1, %v766_v35 }
 0x1ad   : > { %v807_v23 = vmul.f32 %v1344_v39, %v806_v14 }
 0x1ae   : > { %v768_v7 = vadd.f32 %v1342_v1, %v767_v16  ;;  %v1858_v16 = vpop.permute.xlu0 %974 }
 0x1af   : > { %v808_v24 = vadd.f32 %v1344_v39, %v807_v23 }
 0x1b0   : > { %v772_v26 = vsel %vm771_vm3, %v1342_v1, %v768_v7 }
 0x1b1   : > { %v777_v28 = vsel %vm774_vm5, %v776_v59, %v772_v26  ;;  %v812_v31 = vsel %vm811_vm6, %v1344_v39, %v808_v24 }
 0x1b2   : > { %v778_v56 = vmul.f32 %v777_v28, %v753_v55  ;;  %v817_v32 = vsel %vm814_vm7, %v816_v27, %v812_v31  ;;  %v1881_v55 = vpop.permute.xlu1 %1042 }
 0x1b3   : > { %v818_v33 = vmul.f32 %v817_v32, %v793_v29  ;;  %v1887_v29 = vpop.permute.xlu2 %1038 }
 0x1b4   : > { %v1231_v47 = vclamps-f32 %v778_v56, 1.0 }
 0x1b5   : > { %v1232_v41 = vclamps-f32 %v818_v33, 1.0 }
 0x1b6   : > { %v821_v51 = vadd.f32 1.0, %v1231_v47 }
 0x1b7   : > { %v822_v49 = vadd.f32 1.0, %v1232_v41 }
 0x1b8   : > { %v1816_v57 = vmul.f32 %v821_v51, %v737_v53 }
 0x1b9   : > { %v1818_v0 = vmul.f32 %v822_v49, %v738_v54 }
 0x1ba   : > { %v1823_v52 = vperm.slane %v1816_v57, 0  ;;  %v1826_v3 = vperm.slane %v1816_v57, 1  ;;  %v1829_v62 = vperm.slane %v1816_v57, 2  ;;  %v1832_v1 = vperm.slane %v1816_v57, 3 }
 0x1bb   : > { %v1835_v37 = vperm.slane %v1818_v0, 0  ;;  %v1838_v61 = vperm.slane %v1818_v0, 1  ;;  %v1841_v39 = vperm.slane %v1818_v0, 2  ;;  %v1844_v2 = vperm.slane %v1818_v0, 3 }
 0x1bc   : > { %v857_v9 = vmul.f32 %v1823_v52, %v1671_v6  ;;  %v883_v8 = vmul.f32 %v1826_v3, %v1709_v48  ;;  %v917_v13 = vmul.f32 %v1829_v62, %v1784_v4  ;;  %v951_v14 = vmul.f32 %v1832_v1, %v1790_v17 }
 0x1bd   : > { %v858_v35 = vmul.f32 %v1835_v37, %v1671_v6  ;;  %v884_v12 = vmul.f32 %v1838_v61, %v1709_v48  ;;  %v918_v19 = vmul.f32 %v1841_v39, %v1784_v4  ;;  %v952_v22 = vmul.f32 %v1844_v2, %v1790_v17 }
 0x1be   : > { %v891_v18 = vadd.f32 %v883_v8, %v857_v9  ;;  %v852_v6 = vmul.f32 %v1835_v37, %v1673_v43  ;;  %v947_v48 = vmul.f32 %v1832_v1, %v1792_v21  ;;  %v1870_v42 = vmul.f32 %v1844_v2, %v1792_v21 }
 0x1bf   : > { %v892_v23 = vadd.f32 %v884_v12, %v858_v35  ;;  %v878_v7 = vmul.f32 %v1838_v61, %v1692_v11  ;;  %v1875_v4 = vperm.slane %v1818_v0, 4  ;;  %v851_v17 = vmul.f32 %v1823_v52, %v1673_v43 }
 0x1c0   : > { %v925_v59 = vadd.f32 %v917_v13, %v891_v18  ;;  %v877_v24 = vmul.f32 %v1826_v3, %v1692_v11  ;;  %v912_v21 = vmul.f32 %v1841_v39, %v1766_v38  ;;  %v946_v28 = vmul.f32 %v1844_v2, %v1776_v5 }
 0x1c1   : > { %v926_v26 = vadd.f32 %v918_v19, %v892_v23  ;;  %v886_v27 = vadd.f32 %v878_v7, %v852_v6  ;;  %v911_v56 = vmul.f32 %v1829_v62, %v1766_v38  ;;  %v945_v43 = vmul.f32 %v1832_v1, %v1776_v5  ;;  %v1925_v6 = vpop.permute.xlu0 %1030 }
 0x1c2   : > { %v885_v31 = vadd.f32 %v877_v24, %v851_v17  ;;  %v1894_v11 = vperm.slane %v1816_v57, 4  ;;  %v1896_v32 = vadd.f32 %v951_v14, %v925_v59  ;;  %v980_v41 = vmul.f32 %v1875_v4, %v1796_v46  ;;  %v1930_v17 = vpop.permute.xlu1 %1072 }
 0x1c3   : > { %v1898_v33 = vadd.f32 %v952_v22, %v926_v26  ;;  %v920_v47 = vadd.f32 %v912_v21, %v886_v27  ;;  %v982_v38 = vmul.f32 %v1875_v4, %v1794_v30  ;;  %v1908_v5 = vmul.f32 %v1875_v4, %v1800_v36 }
 0x1c4   : > { %v919_v53 = vadd.f32 %v911_v56, %v885_v31  ;;  %v979_v51 = vmul.f32 %v1894_v11, %v1796_v46  ;;  %v1011_v49 = vperm.slane %v1816_v57, 5  ;;  %v1012_v9 = vperm.slane %v1818_v0, 5 }
 0x1c5   : > { %v954_v54 = vadd.f32 %v946_v28, %v920_v47  ;;  %v853_v8 = vmul.f32 %v1823_v52, %v1662_v40  ;;  %v854_v12 = vmul.f32 %v1835_v37, %v1662_v40  ;;  %v879_v46 = vmul.f32 %v1826_v3, %v1702_v15 }
 0x1c6   : > { %v953_v35 = vadd.f32 %v945_v43, %v919_v53  ;;  %v880_v13 = vmul.f32 %v1838_v61, %v1702_v15  ;;  %v981_v18 = vmul.f32 %v1894_v11, %v1794_v30  ;;  %v983_v19 = vmul.f32 %v1894_v11, %v1800_v36  ;;  %v1065_v43 = vpop.permute.xlu2 %1064 }
 0x1c7   : > { %v988_v14 = vadd.f32 %v980_v41, %v954_v54  ;;  %v1013_v22 = vmul.f32 %v1011_v49, %v1798_v58  ;;  %v1014_v40 = vmul.f32 %v1012_v9, %v1798_v58  ;;  %v1017_v7 = vmul.f32 %v1011_v49, %v1804_v20 }
 0x1c8   : > { %v987_v23 = vadd.f32 %v979_v51, %v953_v35  ;;  %v1018_v59 = vmul.f32 %v1012_v9, %v1804_v20  ;;  %v1015_v15 = vmul.f32 %v1011_v49, %v1806_v25  ;;  %v887_v24 = vadd.f32 %v879_v46, %v853_v8 }
 0x1c9   : > { %v888_v30 = vadd.f32 %v880_v13, %v854_v12  ;;  %v913_v36 = vmul.f32 %v1829_v62, %v1802_v34  ;;  %v1937_v27 = vadd.f32 %v1014_v40, %v988_v14  ;;  %v1016_v21 = vmul.f32 %v1012_v9, %v1806_v25 }
 0x1ca   : > { %v1935_v26 = vadd.f32 %v1013_v22, %v987_v23  ;;  %v914_v58 = vmul.f32 %v1841_v39, %v1802_v34  ;;  %v1045_v20 = vperm.slane %v1816_v57, 6  ;;  %v1046_v31 = vperm.slane %v1818_v0, 6 }
 0x1cb   : > { %v921_v28 = vadd.f32 %v913_v36, %v887_v24  ;;  %v855_v56 = vmul.f32 %v1823_v52, %v1686_v44  ;;  %v856_v41 = vmul.f32 %v1835_v37, %v1686_v44  ;;  %v881_v53 = vmul.f32 %v1826_v3, %v1682_v10 }
 0x1cc   : > { %v922_v47 = vadd.f32 %v914_v58, %v888_v30  ;;  %v882_v25 = vmul.f32 %v1838_v61, %v1682_v10  ;;  %v1019_v51 = vmul.f32 %v1011_v49, %v1820_v50  ;;  %v1020_v54 = vmul.f32 %v1012_v9, %v1820_v50 }
 0x1cd   : > { %v955_v34 = vadd.f32 %v947_v48, %v921_v28  ;;  %v915_v8 = vmul.f32 %v1829_v62, %v1753_v60  ;;  %v889_v35 = vadd.f32 %v881_v53, %v855_v56  ;;  %v916_v44 = vmul.f32 %v1841_v39, %v1753_v60  ;;  %v1069_v39 = vpop.permute.xlu0 %1068 }
 0x1ce   : > { %v956_v52 = vadd.f32 %v1870_v42, %v922_v47  ;;  %v890_v12 = vadd.f32 %v882_v25, %v856_v41  ;;  %v1049_v3 = vmul.f32 %v1045_v20, %v1813_v63  ;;  %v1050_v10 = vmul.f32 %v1046_v31, %v1813_v63 }
 0x1cf   : > { %v989_v37 = vadd.f32 %v981_v18, %v955_v34  ;;  %v949_v61 = vmul.f32 %v1832_v1, %v1810_v45  ;;  %v923_v50 = vadd.f32 %v915_v8, %v889_v35  ;;  %v950_v62 = vmul.f32 %v1844_v2, %v1810_v45 }
 0x1d0   : > { %v990_v48 = vadd.f32 %v982_v38, %v956_v52  ;;  %v924_v49 = vadd.f32 %v916_v44, %v890_v12  ;;  %v1053_v9 = vmul.f32 %v1045_v20, %v1881_v55  ;;  %v1054_v46 = vmul.f32 %v1046_v31, %v1881_v55  ;;  %v1104_v38 = vpop.permute.xlu1 %1103 }
 0x1d1   : > { %v1023_v42 = vadd.f32 %v1015_v15, %v989_v37  ;;  %v985_v60 = vmul.f32 %v1894_v11, %v1858_v16  ;;  %v957_v63 = vadd.f32 %v949_v61, %v923_v50  ;;  %v986_v1 = vmul.f32 %v1875_v4, %v1858_v16  ;;  %v1077_v4 = vpop.permute.xlu2 %1076 }
 0x1d2   : > { %v1024_v13 = vadd.f32 %v1016_v21, %v990_v48  ;;  %v958_v14 = vadd.f32 %v950_v62, %v924_v49  ;;  %v1051_v18 = vmul.f32 %v1045_v20, %v1887_v29  ;;  %v1080_v2 = vperm.slane %v1818_v0, 7 }
 0x1d3   : > { %v993_v45 = vadd.f32 %v985_v60, %v1896_v32  ;;  %v1079_v55 = vperm.slane %v1816_v57, 7  ;;  %v991_v22 = vadd.f32 %v983_v19, %v957_v63  ;;  %v1052_v23 = vmul.f32 %v1046_v31, %v1887_v29 }
 0x1d4   : > { %v992_v11 = vadd.f32 %v1908_v5, %v958_v14  ;;  %v994_v40 = vadd.f32 %v986_v1, %v1898_v33  ;;  %v1057_v15 = vadd.f32 %v1049_v3, %v1023_v42  ;;  %v1058_v24 = vadd.f32 %v1050_v10, %v1024_v13 }
 0x1d5   : > { %v1027_v30 = vadd.f32 %v1019_v51, %v993_v45  ;;  %v1081_v16 = vmul.f32 %v1079_v55, %v1065_v43  ;;  %v1025_v32 = vadd.f32 %v1017_v7, %v991_v22  ;;  %v1082_v0 = vmul.f32 %v1080_v2, %v1065_v43  ;;  %v1114_v41 = vpop.permute.xlu0 %1113 }
 0x1d6   : > { %v1026_v36 = vadd.f32 %v1018_v59, %v992_v11  ;;  %v1028_v21 = vadd.f32 %v1020_v54, %v994_v40  ;;  %v1085_v57 = vmul.f32 %v1079_v55, %v1930_v17  ;;  %v1086_v19 = vmul.f32 %v1080_v2, %v1930_v17 }
 0x1d7   : > { %v1047_v5 = vmul.f32 %v1045_v20, %v1925_v6  ;;  %v1048_v29 = vmul.f32 %v1046_v31, %v1925_v6  ;;  %v1059_v33 = vadd.f32 %v1051_v18, %v1025_v32  ;;  %v1087_v28 = vmul.f32 %v1079_v55, %v1077_v4 }
 0x1d8   : > { %v1060_v58 = vadd.f32 %v1052_v23, %v1026_v36  ;;  %v1088_v56 = vmul.f32 %v1080_v2, %v1077_v4  ;;  %v1061_v43 = vadd.f32 %v1053_v9, %v1027_v30  ;;  %v1062_v47 = vadd.f32 %v1054_v46, %v1028_v21  ;;  %v1119_v54 = vpop.permute.xlu1 %1118 }
 0x1d9   : > { %v1055_v59 = vadd.f32 %v1047_v5, %v1935_v26  ;;  %v1056_v7 = vadd.f32 %v1048_v29, %v1937_v27  ;;  %v1083_v53 = vmul.f32 %v1079_v55, %v1069_v39  ;;  %v1084_v17 = vmul.f32 %v1080_v2, %v1069_v39  ;;  %v1109_v27 = vpop.permute.xlu2 %1108 }
 0x1da   : > { %v1093_v25 = vadd.f32 %v1085_v57, %v1059_v33  ;;  %v1094_v20 = vadd.f32 %v1086_v19, %v1060_v58  ;;  %v1095_v31 = vadd.f32 %v1087_v28, %v1061_v43  ;;  %v1096_v51 = vadd.f32 %v1088_v56, %v1062_v47 }
 0x1db   : > { %v1089_v34 = vadd.f32 %v1081_v16, %v1055_v59  ;;  %v1090_v6 = vadd.f32 %v1082_v0, %v1056_v7  ;;  %v1091_v52 = vadd.f32 %v1083_v53, %v1057_v15  ;;  %v1092_v44 = vadd.f32 %v1084_v17, %v1058_v24 }
 0x1dc   : > { %v1125_v8 = vadd.f32 %v1114_v41, %v1093_v25  ;;  %v1127_v26 = vadd.f32 %v1119_v54, %v1095_v31  ;;  %v1128_v37 = vadd.f32 %v1119_v54, %v1096_v51  ;;  %v1126_v3 = vadd.f32 %v1114_v41, %v1094_v20 }
 0x1dd   : > { %v1121_v35 = vadd.f32 %v1104_v38, %v1089_v34  ;;  %v1122_v12 = vadd.f32 %v1104_v38, %v1090_v6  ;;  %v1123_v10 = vadd.f32 %v1109_v27, %v1091_v52  ;;  %v1124_v61 = vadd.f32 %v1109_v27, %v1092_v44 }
 0x1de   : > { %1133 = vst [vmem:[%s352_s25 + $0x20] sm:$0xff] %v1125_v8 }
 0x1df   : > { %1129 = vst [vmem:[%s352_s25] sm:$0xff] %v1121_v35 }
 0x1e0   : > { %1130 = vst [vmem:[%s352_s25 + $0x8] sm:$0xff] %v1122_v12 }
 0x1e1   : > { %1135 = vst [vmem:[%s352_s25 + $0x30] sm:$0xff] %v1127_v26 }
 0x1e2   : > { %1136 = vst [vmem:[%s352_s25 + $0x38] sm:$0xff] %v1128_v37 }
 0x1e3   : > { %1134 = vst [vmem:[%s352_s25 + $0x28] sm:$0xff] %v1126_v3 }
 0x1e4   : > { %1131 = vst [vmem:[%s352_s25 + $0x10] sm:$0xff] %v1123_v10 }
 0x1e5   : > { %1132 = vst [vmem:[%s352_s25 + $0x18] sm:$0xff] %v1124_v61 }
 0x1e6   : > { %1372 = shalt.err (!%p1369_p3)
}
 0x1e7   : > { %s1426_s29 = smov 256   ;;  %s2035_s25 = smov 16  }
 0x1e8   : > { %1240 = dma.vmem_to_hbm [thread:$0]  (%p1520_p5), %s1151_s17, 1024, %s1153_s26, %s1138_s27, %s1426_s29, %s1426_s29, %s2035_s25  }
 0x1e9 PF: > { %p1246_p4 = scmp.ge.s32.totalorder %s1407_s16, 2  ;;  %s1167_s12 = sand.u32 1, %s1395_s13  }
 0x1ea   : > { %s1168_s30 = scalar_lea.sflag [#allocation3], %s1167_s12 }
 0x1eb   : > { %p1243_p7 = pnand %p1246_p4, %p1524_p6 }
 0x1ed   : > { %p1244_p8 = pneg %p1243_p7 }
 0x1ef   : > { %1390 = dma.done.wait (%p1244_p8), %s1168_s30, 1024  }
 0x1f0   : > { %1392 = vsyncadd (%p1244_p8), %s1168_s30, 4294966272  ;;  %p20_p9 = scmp.ge.s32.totalorder %s1507_s19, 4   ;;  %s2036_s13 = smov %s1399_s14 }
 0x1f1   : > { %s2037_s14 = smov %s1403_s15  ;;  %s2038_s15 = smov %s1518_s22 }
 0x1f2   : > { %s2039_s16 = smov %s1507_s19  ;;  %22 = sbr.rel (!%p20_p9) target bundleno = 3 (0x3), region = 102 }
 0x1f7   :  { %1174 = vsyncpa [#allocation3], 1 }
 0x1f8   :  { %1176 = vsyncpa [#allocation3 + $0x1], 1 }

</bundles_post_ra>
